<compile_context>
chip_gen: v7x
topology: tpu7x:2x2x1
jax: 0.10.0
libtpu: 0.0.40
codegen_flags: <defaults>
</compile_context>

<pallas_src>
import jax
import jax.numpy as jnp
import numpy as np
from jax.experimental import pallas as pl
from jax.experimental.pallas import tpu as pltpu


def _round_up(x, m):
    return -(-x // m) * m


def _pick_time_chunk(T, max_chunk=8):
    for c in range(min(T, max_chunk), 0, -1):
        if T % c == 0:
            return c
    return 1


def _make_lstm_kernel(Tc, Bt, Hp):
    """Kernel closure over static sizes. Gate column order: f, i, o, u."""
    f32, bf16 = jnp.float32, jnp.bfloat16

    def _sigmoid(x):
        # Single EUP push per gate (tanh) instead of exp + divide.
        return 0.5 * (jnp.tanh(0.5 * x) + 1.0)

    def kernel(x_ref, wx_ref, wg_ref, out_ref, h_out_ref, c_out_ref, h_sc, c_sc):
        # Reset carried recurrent state at the start of each batch tile's time
        # loop (grid order: for every batch tile, time chunks run 0..n-1).
        @pl.when(pl.program_id(1) == 0)
        def _():
            h_sc[...] = jnp.zeros_like(h_sc)
            c_sc[...] = jnp.zeros_like(c_sc)

        wx = wx_ref[...]            # (I, 4*Hp)  bf16, resident across the grid
        wg = wg_ref[...]            # (Hp, 4*Hp) bf16, bias already folded in

        # Hoisted input projections for this chunk: independent of the
        # recurrence, so the scheduler can issue them off the serial path.
        xw = [jnp.dot(x_ref[t], wx, preferred_element_type=f32)     # (Bt, 4*Hp) f32
              for t in range(Tc)]

        h = h_sc[...]               # f32 state
        c = c_sc[...]

        # TODO(synk): at real batch sizes interleave 2-4 independent batch
        # sub-tiles per timestep (and/or drive the MXU via matmul_push_rhs /
        # matmul_acc_lhs) to fill MXU/EUP slots on the latency-bound chain.
        for t in range(Tc):         # small static chunk; unrolled for the LLO scheduler
            pre = xw[t] + jnp.dot(h.astype(bf16), wg, preferred_element_type=f32)
            f = _sigmoid(pre[:, 0 * Hp:1 * Hp])          # lane-aligned full-vreg slices
            i = _sigmoid(pre[:, 1 * Hp:2 * Hp])
            o = _sigmoid(pre[:, 2 * Hp:3 * Hp])
            u = jnp.tanh(pre[:, 3 * Hp:4 * Hp])
            c = c * f + i * u
            h = o * jnp.tanh(c)
            out_ref[t] = h                                # lane-dense (Bt, Hp) store

        h_sc[...] = h
        c_sc[...] = c
        h_out_ref[...] = h
        c_out_ref[...] = c

    return kernel


def lstm_forward(X, Wx, Wg, b):
    """X: (T, B, I) f32.  Wx: (4, I, H).  Wg: (4, H, H).  b: (4, H).

    Gate stacking order [forget, input, output, update], matching the PyTorch
    module.  Returns (rnn_outputs (T*B, H), (h_final, c_final)).
    """
    T, B, I = X.shape
    H = Wx.shape[-1]
    f32, bf16 = jnp.float32, jnp.bfloat16

    Hp = _round_up(H, 128)              # lane-aligned gates, lane-dense output
    Bp = _round_up(max(B, 8), 8)        # sublane-aligned batch
    Bt = 8
    while Bt * 2 <= min(Bp, 256) and Bp % (Bt * 2) == 0:
        Bt *= 2
    n_btiles = Bp // Bt
    Tc = _pick_time_chunk(T)
    n_tchunks = T // Tc

    # ---- one-time weight prep (outside the recurrence) ----------------------
    # Fold the per-column bias into the recurrent weight (module semantics),
    # fuse the 4 gates along the output dim, zero-pad H -> Hp, cast to bf16.
    Wx_p = jnp.pad(Wx.astype(f32), ((0, 0), (0, 0), (0, Hp - H)))
    Wg_p = jnp.pad((Wg + b[:, None, :]).astype(f32),
                   ((0, 0), (0, Hp - H), (0, Hp - H)))
    Wx_cat = jnp.transpose(Wx_p, (1, 0, 2)).reshape(I, 4 * Hp).astype(bf16)   # (I, 4Hp)
    Wg_cat = jnp.transpose(Wg_p, (1, 0, 2)).reshape(Hp, 4 * Hp).astype(bf16)  # (Hp, 4Hp)

    # bf16 MXU operand for X too (halves the streamed DMA bytes).
    Xp = jnp.pad(X.astype(f32), ((0, 0), (0, Bp - B), (0, 0))).astype(bf16)   # (T, Bp, I)

    kernel = _make_lstm_kernel(Tc, Bt, Hp)

    outs, h_fin, c_fin = pl.pallas_call(
        kernel,
        out_shape=(
            jax.ShapeDtypeStruct((T, Bp, Hp), f32),
            jax.ShapeDtypeStruct((Bp, Hp), f32),
            jax.ShapeDtypeStruct((Bp, Hp), f32),
        ),
        grid_spec=pltpu.PrefetchScalarGridSpec(
            num_scalar_prefetch=0,
            grid=(n_btiles, n_tchunks),
            in_specs=[
                pl.BlockSpec((Tc, Bt, I), lambda bb, tt: (tt, bb, 0)),   # streamed X chunk
                pl.BlockSpec((I, 4 * Hp), lambda bb, tt: (0, 0)),        # fused Wx (resident)
                pl.BlockSpec((Hp, 4 * Hp), lambda bb, tt: (0, 0)),       # fused Wg+bias (resident)
            ],
            out_specs=[
                pl.BlockSpec((Tc, Bt, Hp), lambda bb, tt: (tt, bb, 0)),  # per-step h (lane-dense)
                pl.BlockSpec((Bt, Hp), lambda bb, tt: (bb, 0)),          # final h
                pl.BlockSpec((Bt, Hp), lambda bb, tt: (bb, 0)),          # final c
            ],
            scratch_shapes=[
                pltpu.VMEM((Bt, Hp), f32),   # carried h
                pltpu.VMEM((Bt, Hp), f32),   # carried c
            ],
        ),
        compiler_params=pltpu.CompilerParams(
            dimension_semantics=("parallel", "arbitrary"),
            # Explicit budget; safe on all of v5e/v6e (128 MiB) and v7x (64 MiB).
            vmem_limit_bytes=32 * 1024 * 1024,
        ),
    )(Xp, Wx_cat, Wg_cat)

    # torch.cat(rnn_outputs, dim=0): drop batch/H padding, keep (T*B, H) layout.
    rnn_outputs = outs[:, :B, :H].reshape(T * B, H)
    return rnn_outputs, (h_fin[:B, :H], c_fin[:B, :H])


def _reference_lstm(X, Wx, Wg, b):
    """Pure-JAX f32 reference mirroring the PyTorch forward exactly."""
    T, B, I = X.shape
    H = Wx.shape[-1]
    h = jnp.zeros((B, H), jnp.float32)
    c = jnp.zeros((B, H), jnp.float32)
    outs = []
    for t in range(T):
        x = X[t]
        f = jax.nn.sigmoid(x @ Wx[0] + h @ (Wg[0] + b[0]))
        i = jax.nn.sigmoid(x @ Wx[1] + h @ (Wg[1] + b[1]))
        o = jax.nn.sigmoid(x @ Wx[2] + h @ (Wg[2] + b[2]))
        u = jnp.tanh(x @ Wx[3] + h @ (Wg[3] + b[3]))
        c = c * f + i * u
        h = o * jnp.tanh(c)
        outs.append(h)
    return jnp.concatenate(outs, axis=0), (h, c)


if __name__ == "__main__":
    # module hyperparameters
    num_inputs = 16
    num_hiddens = 32
    sigma = 0.01
    T, B = 8, 4

    key = jax.random.PRNGKey(0)
    kx, kwx, kwg = jax.random.split(key, 3)

    # stacked gate order: [forget, input, output, update]; biases start at 0
    Wx = (sigma * jax.random.normal(kwx, (4, num_inputs, num_hiddens))).astype(jnp.float32)
    Wg = (sigma * jax.random.normal(kwg, (4, num_hiddens, num_hiddens))).astype(jnp.float32)
    b = jnp.zeros((4, num_hiddens), jnp.float32)   # b_fg, b_ig, b_og, b_ug

    X = jax.random.normal(kx, (T, B, num_inputs), jnp.float32)

    rnn_out, (h_fin, c_fin) = lstm_forward(X, Wx, Wg, b)
    jax.block_until_ready((rnn_out, h_fin, c_fin))

    ref_out, (ref_h, ref_c) = _reference_lstm(X, Wx, Wg, b)
    assert rnn_out.shape == (T * B, num_hiddens)
    # bf16 MXU operands -> loosened tolerances vs. the pure-f32 reference.
    np.testing.assert_allclose(np.asarray(rnn_out), np.asarray(ref_out), rtol=3e-2, atol=3e-3)
    np.testing.assert_allclose(np.asarray(h_fin), np.asarray(ref_h), rtol=3e-2, atol=3e-3)
    np.testing.assert_allclose(np.asarray(c_fin), np.asarray(ref_c), rtol=3e-2, atol=3e-3)

    print("KERNEL_OK")
</pallas_src>

<mosaic_0001>
module attributes {stable_mosaic.version = 11 : i64} {
  func.func @kernel(%arg0: i32, %arg1: i32, %arg2: memref<8x8x16xbf16, #tpu.memory_space<vmem>>, %arg3: memref<16x512xbf16, #tpu.memory_space<vmem>>, %arg4: memref<128x512xbf16, #tpu.memory_space<vmem>>, %arg5: memref<8x8x128xf32, #tpu.memory_space<vmem>>, %arg6: memref<8x128xf32, #tpu.memory_space<vmem>>, %arg7: memref<8x128xf32, #tpu.memory_space<vmem>>, %arg8: memref<8x128xf32, #tpu.memory_space<vmem>>, %arg9: memref<8x128xf32, #tpu.memory_space<vmem>>) attributes {dimension_semantics = [#tpu.dimension_semantics<parallel>, #tpu.dimension_semantics<arbitrary>], iteration_bounds = array<i64: 1, 1>, scalar_prefetch = 0 : i64, scratch_operands = 2 : i64, tpu.core_type = #tpu.core_type<tc>, window_params = [{transform_indices = @transform_0, window_bounds = array<i64: 8, 8, 16>}, {pipeline_mode = #tpu.pipeline_mode<synchronous>, transform_indices = @transform_1, window_bounds = array<i64: 16, 512>}, {pipeline_mode = #tpu.pipeline_mode<synchronous>, transform_indices = @transform_2, window_bounds = array<i64: 128, 512>}, {transform_indices = @transform_3, window_bounds = array<i64: 8, 8, 128>}, {transform_indices = @transform_4, window_bounds = array<i64: 8, 128>}, {transform_indices = @transform_5, window_bounds = array<i64: 8, 128>}]} {
    %c0_i32 = arith.constant 0 : i32
    %0 = arith.cmpi eq, %arg1, %c0_i32 : i32
    %1 = arith.extui %0 : i1 to i32
    %c0_i32_0 = arith.constant 0 : i32
    %2 = arith.cmpi ne, %1, %c0_i32_0 : i32
    scf.if %2 {
      %cst_144 = arith.constant 0.000000e+00 : f32
      %331 = vector.broadcast %cst_144 : f32 to vector<8x128xf32>
      %c0_145 = arith.constant 0 : index
      %c0_146 = arith.constant 0 : index
      %332 = vector.load %arg8[%c0_145, %c0_146] : memref<8x128xf32, #tpu.memory_space<vmem>>, vector<8x128xf32>
      tpu.vector_store %arg8[%c0_145, %c0_146], %331 {strides = array<i32>} : memref<8x128xf32, #tpu.memory_space<vmem>>, vector<8x128xf32>,
      %cst_147 = arith.constant 0.000000e+00 : f32
      %333 = vector.broadcast %cst_147 : f32 to vector<8x128xf32>
      %c0_148 = arith.constant 0 : index
      %c0_149 = arith.constant 0 : index
      %334 = vector.load %arg9[%c0_148, %c0_149] : memref<8x128xf32, #tpu.memory_space<vmem>>, vector<8x128xf32>
      tpu.vector_store %arg9[%c0_148, %c0_149], %333 {strides = array<i32>} : memref<8x128xf32, #tpu.memory_space<vmem>>, vector<8x128xf32>,
    } else {
    }
    %c0 = arith.constant 0 : index
    %c0_1 = arith.constant 0 : index
    %3 = vector.load %arg3[%c0, %c0_1] : memref<16x512xbf16, #tpu.memory_space<vmem>>, vector<16x512xbf16>
    %c0_2 = arith.constant 0 : index
    %c0_3 = arith.constant 0 : index
    %4 = vector.load %arg4[%c0_2, %c0_3] : memref<128x512xbf16, #tpu.memory_space<vmem>>, vector<128x512xbf16>
    %c0_4 = arith.constant 0 : index
    %c0_5 = arith.constant 0 : index
    %c0_6 = arith.constant 0 : index
    %5 = vector.load %arg2[%c0_4, %c0_5, %c0_6] : memref<8x8x16xbf16, #tpu.memory_space<vmem>>, vector<1x8x16xbf16>
    %6 = vector.shape_cast %5 : vector<1x8x16xbf16> to vector<8x16xbf16>
    %cst = arith.constant dense<0.000000e+00> : vector<8x512xf32>
    %7 = tpu.matmul %6, %3, %cst {dimension_numbers = #tpu.dot_dimension_numbers<[1], [0], [0], [1], [0, 0, 1, 1], [], []>} : vector<8x16xbf16>, vector<16x512xbf16>, vector<8x512xf32> -> vector<8x512xf32>
    %c1 = arith.constant 1 : index
    %c0_7 = arith.constant 0 : index
    %c0_8 = arith.constant 0 : index
    %8 = vector.load %arg2[%c1, %c0_7, %c0_8] : memref<8x8x16xbf16, #tpu.memory_space<vmem>>, vector<1x8x16xbf16>
    %9 = vector.shape_cast %8 : vector<1x8x16xbf16> to vector<8x16xbf16>
    %cst_9 = arith.constant dense<0.000000e+00> : vector<8x512xf32>
    %10 = tpu.matmul %9, %3, %cst_9 {dimension_numbers = #tpu.dot_dimension_numbers<[1], [0], [0], [1], [0, 0, 1, 1], [], []>} : vector<8x16xbf16>, vector<16x512xbf16>, vector<8x512xf32> -> vector<8x512xf32>
    %c2 = arith.constant 2 : index
    %c0_10 = arith.constant 0 : index
    %c0_11 = arith.constant 0 : index
    %11 = vector.load %arg2[%c2, %c0_10, %c0_11] : memref<8x8x16xbf16, #tpu.memory_space<vmem>>, vector<1x8x16xbf16>
    %12 = vector.shape_cast %11 : vector<1x8x16xbf16> to vector<8x16xbf16>
    %cst_12 = arith.constant dense<0.000000e+00> : vector<8x512xf32>
    %13 = tpu.matmul %12, %3, %cst_12 {dimension_numbers = #tpu.dot_dimension_numbers<[1], [0], [0], [1], [0, 0, 1, 1], [], []>} : vector<8x16xbf16>, vector<16x512xbf16>, vector<8x512xf32> -> vector<8x512xf32>
    %c3 = arith.constant 3 : index
    %c0_13 = arith.constant 0 : index
    %c0_14 = arith.constant 0 : index
    %14 = vector.load %arg2[%c3, %c0_13, %c0_14] : memref<8x8x16xbf16, #tpu.memory_space<vmem>>, vector<1x8x16xbf16>
    %15 = vector.shape_cast %14 : vector<1x8x16xbf16> to vector<8x16xbf16>
    %cst_15 = arith.constant dense<0.000000e+00> : vector<8x512xf32>
    %16 = tpu.matmul %15, %3, %cst_15 {dimension_numbers = #tpu.dot_dimension_numbers<[1], [0], [0], [1], [0, 0, 1, 1], [], []>} : vector<8x16xbf16>, vector<16x512xbf16>, vector<8x512xf32> -> vector<8x512xf32>
    %c4 = arith.constant 4 : index
    %c0_16 = arith.constant 0 : index
    %c0_17 = arith.constant 0 : index
    %17 = vector.load %arg2[%c4, %c0_16, %c0_17] : memref<8x8x16xbf16, #tpu.memory_space<vmem>>, vector<1x8x16xbf16>
    %18 = vector.shape_cast %17 : vector<1x8x16xbf16> to vector<8x16xbf16>
    %cst_18 = arith.constant dense<0.000000e+00> : vector<8x512xf32>
    %19 = tpu.matmul %18, %3, %cst_18 {dimension_numbers = #tpu.dot_dimension_numbers<[1], [0], [0], [1], [0, 0, 1, 1], [], []>} : vector<8x16xbf16>, vector<16x512xbf16>, vector<8x512xf32> -> vector<8x512xf32>
    %c5 = arith.constant 5 : index
    %c0_19 = arith.constant 0 : index
    %c0_20 = arith.constant 0 : index
    %20 = vector.load %arg2[%c5, %c0_19, %c0_20] : memref<8x8x16xbf16, #tpu.memory_space<vmem>>, vector<1x8x16xbf16>
    %21 = vector.shape_cast %20 : vector<1x8x16xbf16> to vector<8x16xbf16>
    %cst_21 = arith.constant dense<0.000000e+00> : vector<8x512xf32>
    %22 = tpu.matmul %21, %3, %cst_21 {dimension_numbers = #tpu.dot_dimension_numbers<[1], [0], [0], [1], [0, 0, 1, 1], [], []>} : vector<8x16xbf16>, vector<16x512xbf16>, vector<8x512xf32> -> vector<8x512xf32>
    %c6 = arith.constant 6 : index
    %c0_22 = arith.constant 0 : index
    %c0_23 = arith.constant 0 : index
    %23 = vector.load %arg2[%c6, %c0_22, %c0_23] : memref<8x8x16xbf16, #tpu.memory_space<vmem>>, vector<1x8x16xbf16>
    %24 = vector.shape_cast %23 : vector<1x8x16xbf16> to vector<8x16xbf16>
    %cst_24 = arith.constant dense<0.000000e+00> : vector<8x512xf32>
    %25 = tpu.matmul %24, %3, %cst_24 {dimension_numbers = #tpu.dot_dimension_numbers<[1], [0], [0], [1], [0, 0, 1, 1], [], []>} : vector<8x16xbf16>, vector<16x512xbf16>, vector<8x512xf32> -> vector<8x512xf32>
    %c7 = arith.constant 7 : index
    %c0_25 = arith.constant 0 : index
    %c0_26 = arith.constant 0 : index
    %26 = vector.load %arg2[%c7, %c0_25, %c0_26] : memref<8x8x16xbf16, #tpu.memory_space<vmem>>, vector<1x8x16xbf16>
    %27 = vector.shape_cast %26 : vector<1x8x16xbf16> to vector<8x16xbf16>
    %cst_27 = arith.constant dense<0.000000e+00> : vector<8x512xf32>
    %28 = tpu.matmul %27, %3, %cst_27 {dimension_numbers = #tpu.dot_dimension_numbers<[1], [0], [0], [1], [0, 0, 1, 1], [], []>} : vector<8x16xbf16>, vector<16x512xbf16>, vector<8x512xf32> -> vector<8x512xf32>
    %c0_28 = arith.constant 0 : index
    %c0_29 = arith.constant 0 : index
    %29 = vector.load %arg8[%c0_28, %c0_29] : memref<8x128xf32, #tpu.memory_space<vmem>>, vector<8x128xf32>
    %c0_30 = arith.constant 0 : index
    %c0_31 = arith.constant 0 : index
    %30 = vector.load %arg9[%c0_30, %c0_31] : memref<8x128xf32, #tpu.memory_space<vmem>>, vector<8x128xf32>
    %31 = arith.truncf %29 : vector<8x128xf32> to vector<8x128xbf16>
    %cst_32 = arith.constant dense<0.000000e+00> : vector<8x512xf32>
    %32 = tpu.matmul %31, %4, %cst_32 {dimension_numbers = #tpu.dot_dimension_numbers<[1], [0], [0], [1], [0, 0, 1, 1], [], []>} : vector<8x128xbf16>, vector<128x512xbf16>, vector<8x512xf32> -> vector<8x512xf32>
    %33 = arith.addf %7, %32 : vector<8x512xf32>
    %34 = vector.extract_strided_slice %33 {offsets = [0, 0], sizes = [8, 128], strides = [1, 1]} : vector<8x512xf32> to vector<8x128xf32>
    %cst_33 = arith.constant 5.000000e-01 : f32
    %35 = vector.broadcast %cst_33 : f32 to vector<8x128xf32>
    %36 = arith.mulf %35, %34 : vector<8x128xf32>
    %37 = math.tanh %36 : vector<8x128xf32>
    %cst_34 = arith.constant 1.000000e+00 : f32
    %38 = vector.broadcast %cst_34 : f32 to vector<8x128xf32>
    %39 = arith.addf %37, %38 : vector<8x128xf32>
    %cst_35 = arith.constant 5.000000e-01 : f32
    %40 = vector.broadcast %cst_35 : f32 to vector<8x128xf32>
    %41 = arith.mulf %40, %39 : vector<8x128xf32>
    %42 = vector.extract_strided_slice %33 {offsets = [0, 128], sizes = [8, 128], strides = [1, 1]} : vector<8x512xf32> to vector<8x128xf32>
    %cst_36 = arith.constant 5.000000e-01 : f32
    %43 = vector.broadcast %cst_36 : f32 to vector<8x128xf32>
    %44 = arith.mulf %43, %42 : vector<8x128xf32>
    %45 = math.tanh %44 : vector<8x128xf32>
    %cst_37 = arith.constant 1.000000e+00 : f32
    %46 = vector.broadcast %cst_37 : f32 to vector<8x128xf32>
    %47 = arith.addf %45, %46 : vector<8x128xf32>
    %cst_38 = arith.constant 5.000000e-01 : f32
    %48 = vector.broadcast %cst_38 : f32 to vector<8x128xf32>
    %49 = arith.mulf %48, %47 : vector<8x128xf32>
    %50 = vector.extract_strided_slice %33 {offsets = [0, 256], sizes = [8, 128], strides = [1, 1]} : vector<8x512xf32> to vector<8x128xf32>
    %cst_39 = arith.constant 5.000000e-01 : f32
    %51 = vector.broadcast %cst_39 : f32 to vector<8x128xf32>
    %52 = arith.mulf %51, %50 : vector<8x128xf32>
    %53 = math.tanh %52 : vector<8x128xf32>
    %cst_40 = arith.constant 1.000000e+00 : f32
    %54 = vector.broadcast %cst_40 : f32 to vector<8x128xf32>
    %55 = arith.addf %53, %54 : vector<8x128xf32>
    %cst_41 = arith.constant 5.000000e-01 : f32
    %56 = vector.broadcast %cst_41 : f32 to vector<8x128xf32>
    %57 = arith.mulf %56, %55 : vector<8x128xf32>
    %58 = vector.extract_strided_slice %33 {offsets = [0, 384], sizes = [8, 128], strides = [1, 1]} : vector<8x512xf32> to vector<8x128xf32>
    %59 = math.tanh %58 : vector<8x128xf32>
    %60 = arith.mulf %30, %41 : vector<8x128xf32>
    %61 = arith.mulf %49, %59 : vector<8x128xf32>
    %62 = arith.addf %60, %61 : vector<8x128xf32>
    %63 = math.tanh %62 : vector<8x128xf32>
    %64 = arith.mulf %57, %63 : vector<8x128xf32>
    %c0_42 = arith.constant 0 : index
    %c0_43 = arith.constant 0 : index
    %c0_44 = arith.constant 0 : index
    %65 = vector.load %arg5[%c0_42, %c0_43, %c0_44] : memref<8x8x128xf32, #tpu.memory_space<vmem>>, vector<1x8x128xf32>
    %66 = vector.shape_cast %65 : vector<1x8x128xf32> to vector<8x128xf32>
    %67 = vector.shape_cast %64 : vector<8x128xf32> to vector<1x8x128xf32>
    tpu.vector_store %arg5[%c0_42, %c0_43, %c0_44], %67 {strides = array<i32>} : memref<8x8x128xf32, #tpu.memory_space<vmem>>, vector<1x8x128xf32>,
    %68 = arith.truncf %64 : vector<8x128xf32> to vector<8x128xbf16>
    %cst_45 = arith.constant dense<0.000000e+00> : vector<8x512xf32>
    %69 = tpu.matmul %68, %4, %cst_45 {dimension_numbers = #tpu.dot_dimension_numbers<[1], [0], [0], [1], [0, 0, 1, 1], [], []>} : vector<8x128xbf16>, vector<128x512xbf16>, vector<8x512xf32> -> vector<8x512xf32>
    %70 = arith.addf %10, %69 : vector<8x512xf32>
    %71 = vector.extract_strided_slice %70 {offsets = [0, 0], sizes = [8, 128], strides = [1, 1]} : vector<8x512xf32> to vector<8x128xf32>
    %cst_46 = arith.constant 5.000000e-01 : f32
    %72 = vector.broadcast %cst_46 : f32 to vector<8x128xf32>
    %73 = arith.mulf %72, %71 : vector<8x128xf32>
    %74 = math.tanh %73 : vector<8x128xf32>
    %cst_47 = arith.constant 1.000000e+00 : f32
    %75 = vector.broadcast %cst_47 : f32 to vector<8x128xf32>
    %76 = arith.addf %74, %75 : vector<8x128xf32>
    %cst_48 = arith.constant 5.000000e-01 : f32
    %77 = vector.broadcast %cst_48 : f32 to vector<8x128xf32>
    %78 = arith.mulf %77, %76 : vector<8x128xf32>
    %79 = vector.extract_strided_slice %70 {offsets = [0, 128], sizes = [8, 128], strides = [1, 1]} : vector<8x512xf32> to vector<8x128xf32>
    %cst_49 = arith.constant 5.000000e-01 : f32
    %80 = vector.broadcast %cst_49 : f32 to vector<8x128xf32>
    %81 = arith.mulf %80, %79 : vector<8x128xf32>
    %82 = math.tanh %81 : vector<8x128xf32>
    %cst_50 = arith.constant 1.000000e+00 : f32
    %83 = vector.broadcast %cst_50 : f32 to vector<8x128xf32>
    %84 = arith.addf %82, %83 : vector<8x128xf32>
    %cst_51 = arith.constant 5.000000e-01 : f32
    %85 = vector.broadcast %cst_51 : f32 to vector<8x128xf32>
    %86 = arith.mulf %85, %84 : vector<8x128xf32>
    %87 = vector.extract_strided_slice %70 {offsets = [0, 256], sizes = [8, 128], strides = [1, 1]} : vector<8x512xf32> to vector<8x128xf32>
    %cst_52 = arith.constant 5.000000e-01 : f32
    %88 = vector.broadcast %cst_52 : f32 to vector<8x128xf32>
    %89 = arith.mulf %88, %87 : vector<8x128xf32>
    %90 = math.tanh %89 : vector<8x128xf32>
    %cst_53 = arith.constant 1.000000e+00 : f32
    %91 = vector.broadcast %cst_53 : f32 to vector<8x128xf32>
    %92 = arith.addf %90, %91 : vector<8x128xf32>
    %cst_54 = arith.constant 5.000000e-01 : f32
    %93 = vector.broadcast %cst_54 : f32 to vector<8x128xf32>
    %94 = arith.mulf %93, %92 : vector<8x128xf32>
    %95 = vector.extract_strided_slice %70 {offsets = [0, 384], sizes = [8, 128], strides = [1, 1]} : vector<8x512xf32> to vector<8x128xf32>
    %96 = math.tanh %95 : vector<8x128xf32>
    %97 = arith.mulf %62, %78 : vector<8x128xf32>
    %98 = arith.mulf %86, %96 : vector<8x128xf32>
    %99 = arith.addf %97, %98 : vector<8x128xf32>
    %100 = math.tanh %99 : vector<8x128xf32>
    %101 = arith.mulf %94, %100 : vector<8x128xf32>
    %c1_55 = arith.constant 1 : index
    %c0_56 = arith.constant 0 : index
    %c0_57 = arith.constant 0 : index
    %102 = vector.load %arg5[%c1_55, %c0_56, %c0_57] : memref<8x8x128xf32, #tpu.memory_space<vmem>>, vector<1x8x128xf32>
    %103 = vector.shape_cast %102 : vector<1x8x128xf32> to vector<8x128xf32>
    %104 = vector.shape_cast %101 : vector<8x128xf32> to vector<1x8x128xf32>
    tpu.vector_store %arg5[%c1_55, %c0_56, %c0_57], %104 {strides = array<i32>} : memref<8x8x128xf32, #tpu.memory_space<vmem>>, vector<1x8x128xf32>,
    %105 = arith.truncf %101 : vector<8x128xf32> to vector<8x128xbf16>
    %cst_58 = arith.constant dense<0.000000e+00> : vector<8x512xf32>
    %106 = tpu.matmul %105, %4, %cst_58 {dimension_numbers = #tpu.dot_dimension_numbers<[1], [0], [0], [1], [0, 0, 1, 1], [], []>} : vector<8x128xbf16>, vector<128x512xbf16>, vector<8x512xf32> -> vector<8x512xf32>
    %107 = arith.addf %13, %106 : vector<8x512xf32>
    %108 = vector.extract_strided_slice %107 {offsets = [0, 0], sizes = [8, 128], strides = [1, 1]} : vector<8x512xf32> to vector<8x128xf32>
    %cst_59 = arith.constant 5.000000e-01 : f32
    %109 = vector.broadcast %cst_59 : f32 to vector<8x128xf32>
    %110 = arith.mulf %109, %108 : vector<8x128xf32>
    %111 = math.tanh %110 : vector<8x128xf32>
    %cst_60 = arith.constant 1.000000e+00 : f32
    %112 = vector.broadcast %cst_60 : f32 to vector<8x128xf32>
    %113 = arith.addf %111, %112 : vector<8x128xf32>
    %cst_61 = arith.constant 5.000000e-01 : f32
    %114 = vector.broadcast %cst_61 : f32 to vector<8x128xf32>
    %115 = arith.mulf %114, %113 : vector<8x128xf32>
    %116 = vector.extract_strided_slice %107 {offsets = [0, 128], sizes = [8, 128], strides = [1, 1]} : vector<8x512xf32> to vector<8x128xf32>
    %cst_62 = arith.constant 5.000000e-01 : f32
    %117 = vector.broadcast %cst_62 : f32 to vector<8x128xf32>
    %118 = arith.mulf %117, %116 : vector<8x128xf32>
    %119 = math.tanh %118 : vector<8x128xf32>
    %cst_63 = arith.constant 1.000000e+00 : f32
    %120 = vector.broadcast %cst_63 : f32 to vector<8x128xf32>
    %121 = arith.addf %119, %120 : vector<8x128xf32>
    %cst_64 = arith.constant 5.000000e-01 : f32
    %122 = vector.broadcast %cst_64 : f32 to vector<8x128xf32>
    %123 = arith.mulf %122, %121 : vector<8x128xf32>
    %124 = vector.extract_strided_slice %107 {offsets = [0, 256], sizes = [8, 128], strides = [1, 1]} : vector<8x512xf32> to vector<8x128xf32>
    %cst_65 = arith.constant 5.000000e-01 : f32
    %125 = vector.broadcast %cst_65 : f32 to vector<8x128xf32>
    %126 = arith.mulf %125, %124 : vector<8x128xf32>
    %127 = math.tanh %126 : vector<8x128xf32>
    %cst_66 = arith.constant 1.000000e+00 : f32
    %128 = vector.broadcast %cst_66 : f32 to vector<8x128xf32>
    %129 = arith.addf %127, %128 : vector<8x128xf32>
    %cst_67 = arith.constant 5.000000e-01 : f32
    %130 = vector.broadcast %cst_67 : f32 to vector<8x128xf32>
    %131 = arith.mulf %130, %129 : vector<8x128xf32>
    %132 = vector.extract_strided_slice %107 {offsets = [0, 384], sizes = [8, 128], strides = [1, 1]} : vector<8x512xf32> to vector<8x128xf32>
    %133 = math.tanh %132 : vector<8x128xf32>
    %134 = arith.mulf %99, %115 : vector<8x128xf32>
    %135 = arith.mulf %123, %133 : vector<8x128xf32>
    %136 = arith.addf %134, %135 : vector<8x128xf32>
    %137 = math.tanh %136 : vector<8x128xf32>
    %138 = arith.mulf %131, %137 : vector<8x128xf32>
    %c2_68 = arith.constant 2 : index
    %c0_69 = arith.constant 0 : index
    %c0_70 = arith.constant 0 : index
    %139 = vector.load %arg5[%c2_68, %c0_69, %c0_70] : memref<8x8x128xf32, #tpu.memory_space<vmem>>, vector<1x8x128xf32>
    %140 = vector.shape_cast %139 : vector<1x8x128xf32> to vector<8x128xf32>
    %141 = vector.shape_cast %138 : vector<8x128xf32> to vector<1x8x128xf32>
    tpu.vector_store %arg5[%c2_68, %c0_69, %c0_70], %141 {strides = array<i32>} : memref<8x8x128xf32, #tpu.memory_space<vmem>>, vector<1x8x128xf32>,
    %142 = arith.truncf %138 : vector<8x128xf32> to vector<8x128xbf16>
    %cst_71 = arith.constant dense<0.000000e+00> : vector<8x512xf32>
    %143 = tpu.matmul %142, %4, %cst_71 {dimension_numbers = #tpu.dot_dimension_numbers<[1], [0], [0], [1], [0, 0, 1, 1], [], []>} : vector<8x128xbf16>, vector<128x512xbf16>, vector<8x512xf32> -> vector<8x512xf32>
    %144 = arith.addf %16, %143 : vector<8x512xf32>
    %145 = vector.extract_strided_slice %144 {offsets = [0, 0], sizes = [8, 128], strides = [1, 1]} : vector<8x512xf32> to vector<8x128xf32>
    %cst_72 = arith.constant 5.000000e-01 : f32
    %146 = vector.broadcast %cst_72 : f32 to vector<8x128xf32>
    %147 = arith.mulf %146, %145 : vector<8x128xf32>
    %148 = math.tanh %147 : vector<8x128xf32>
    %cst_73 = arith.constant 1.000000e+00 : f32
    %149 = vector.broadcast %cst_73 : f32 to vector<8x128xf32>
    %150 = arith.addf %148, %149 : vector<8x128xf32>
    %cst_74 = arith.constant 5.000000e-01 : f32
    %151 = vector.broadcast %cst_74 : f32 to vector<8x128xf32>
    %152 = arith.mulf %151, %150 : vector<8x128xf32>
    %153 = vector.extract_strided_slice %144 {offsets = [0, 128], sizes = [8, 128], strides = [1, 1]} : vector<8x512xf32> to vector<8x128xf32>
    %cst_75 = arith.constant 5.000000e-01 : f32
    %154 = vector.broadcast %cst_75 : f32 to vector<8x128xf32>
    %155 = arith.mulf %154, %153 : vector<8x128xf32>
    %156 = math.tanh %155 : vector<8x128xf32>
    %cst_76 = arith.constant 1.000000e+00 : f32
    %157 = vector.broadcast %cst_76 : f32 to vector<8x128xf32>
    %158 = arith.addf %156, %157 : vector<8x128xf32>
    %cst_77 = arith.constant 5.000000e-01 : f32
    %159 = vector.broadcast %cst_77 : f32 to vector<8x128xf32>
    %160 = arith.mulf %159, %158 : vector<8x128xf32>
    %161 = vector.extract_strided_slice %144 {offsets = [0, 256], sizes = [8, 128], strides = [1, 1]} : vector<8x512xf32> to vector<8x128xf32>
    %cst_78 = arith.constant 5.000000e-01 : f32
    %162 = vector.broadcast %cst_78 : f32 to vector<8x128xf32>
    %163 = arith.mulf %162, %161 : vector<8x128xf32>
    %164 = math.tanh %163 : vector<8x128xf32>
    %cst_79 = arith.constant 1.000000e+00 : f32
    %165 = vector.broadcast %cst_79 : f32 to vector<8x128xf32>
    %166 = arith.addf %164, %165 : vector<8x128xf32>
    %cst_80 = arith.constant 5.000000e-01 : f32
    %167 = vector.broadcast %cst_80 : f32 to vector<8x128xf32>
    %168 = arith.mulf %167, %166 : vector<8x128xf32>
    %169 = vector.extract_strided_slice %144 {offsets = [0, 384], sizes = [8, 128], strides = [1, 1]} : vector<8x512xf32> to vector<8x128xf32>
    %170 = math.tanh %169 : vector<8x128xf32>
    %171 = arith.mulf %136, %152 : vector<8x128xf32>
    %172 = arith.mulf %160, %170 : vector<8x128xf32>
    %173 = arith.addf %171, %172 : vector<8x128xf32>
    %174 = math.tanh %173 : vector<8x128xf32>
    %175 = arith.mulf %168, %174 : vector<8x128xf32>
    %c3_81 = arith.constant 3 : index
    %c0_82 = arith.constant 0 : index
    %c0_83 = arith.constant 0 : index
    %176 = vector.load %arg5[%c3_81, %c0_82, %c0_83] : memref<8x8x128xf32, #tpu.memory_space<vmem>>, vector<1x8x128xf32>
    %177 = vector.shape_cast %176 : vector<1x8x128xf32> to vector<8x128xf32>
    %178 = vector.shape_cast %175 : vector<8x128xf32> to vector<1x8x128xf32>
    tpu.vector_store %arg5[%c3_81, %c0_82, %c0_83], %178 {strides = array<i32>} : memref<8x8x128xf32, #tpu.memory_space<vmem>>, vector<1x8x128xf32>,
    %179 = arith.truncf %175 : vector<8x128xf32> to vector<8x128xbf16>
    %cst_84 = arith.constant dense<0.000000e+00> : vector<8x512xf32>
    %180 = tpu.matmul %179, %4, %cst_84 {dimension_numbers = #tpu.dot_dimension_numbers<[1], [0], [0], [1], [0, 0, 1, 1], [], []>} : vector<8x128xbf16>, vector<128x512xbf16>, vector<8x512xf32> -> vector<8x512xf32>
    %181 = arith.addf %19, %180 : vector<8x512xf32>
    %182 = vector.extract_strided_slice %181 {offsets = [0, 0], sizes = [8, 128], strides = [1, 1]} : vector<8x512xf32> to vector<8x128xf32>
    %cst_85 = arith.constant 5.000000e-01 : f32
    %183 = vector.broadcast %cst_85 : f32 to vector<8x128xf32>
    %184 = arith.mulf %183, %182 : vector<8x128xf32>
    %185 = math.tanh %184 : vector<8x128xf32>
    %cst_86 = arith.constant 1.000000e+00 : f32
    %186 = vector.broadcast %cst_86 : f32 to vector<8x128xf32>
    %187 = arith.addf %185, %186 : vector<8x128xf32>
    %cst_87 = arith.constant 5.000000e-01 : f32
    %188 = vector.broadcast %cst_87 : f32 to vector<8x128xf32>
    %189 = arith.mulf %188, %187 : vector<8x128xf32>
    %190 = vector.extract_strided_slice %181 {offsets = [0, 128], sizes = [8, 128], strides = [1, 1]} : vector<8x512xf32> to vector<8x128xf32>
    %cst_88 = arith.constant 5.000000e-01 : f32
    %191 = vector.broadcast %cst_88 : f32 to vector<8x128xf32>
    %192 = arith.mulf %191, %190 : vector<8x128xf32>
    %193 = math.tanh %192 : vector<8x128xf32>
    %cst_89 = arith.constant 1.000000e+00 : f32
    %194 = vector.broadcast %cst_89 : f32 to vector<8x128xf32>
    %195 = arith.addf %193, %194 : vector<8x128xf32>
    %cst_90 = arith.constant 5.000000e-01 : f32
    %196 = vector.broadcast %cst_90 : f32 to vector<8x128xf32>
    %197 = arith.mulf %196, %195 : vector<8x128xf32>
    %198 = vector.extract_strided_slice %181 {offsets = [0, 256], sizes = [8, 128], strides = [1, 1]} : vector<8x512xf32> to vector<8x128xf32>
    %cst_91 = arith.constant 5.000000e-01 : f32
    %199 = vector.broadcast %cst_91 : f32 to vector<8x128xf32>
    %200 = arith.mulf %199, %198 : vector<8x128xf32>
    %201 = math.tanh %200 : vector<8x128xf32>
    %cst_92 = arith.constant 1.000000e+00 : f32
    %202 = vector.broadcast %cst_92 : f32 to vector<8x128xf32>
    %203 = arith.addf %201, %202 : vector<8x128xf32>
    %cst_93 = arith.constant 5.000000e-01 : f32
    %204 = vector.broadcast %cst_93 : f32 to vector<8x128xf32>
    %205 = arith.mulf %204, %203 : vector<8x128xf32>
    %206 = vector.extract_strided_slice %181 {offsets = [0, 384], sizes = [8, 128], strides = [1, 1]} : vector<8x512xf32> to vector<8x128xf32>
    %207 = math.tanh %206 : vector<8x128xf32>
    %208 = arith.mulf %173, %189 : vector<8x128xf32>
    %209 = arith.mulf %197, %207 : vector<8x128xf32>
    %210 = arith.addf %208, %209 : vector<8x128xf32>
    %211 = math.tanh %210 : vector<8x128xf32>
    %212 = arith.mulf %205, %211 : vector<8x128xf32>
    %c4_94 = arith.constant 4 : index
    %c0_95 = arith.constant 0 : index
    %c0_96 = arith.constant 0 : index
    %213 = vector.load %arg5[%c4_94, %c0_95, %c0_96] : memref<8x8x128xf32, #tpu.memory_space<vmem>>, vector<1x8x128xf32>
    %214 = vector.shape_cast %213 : vector<1x8x128xf32> to vector<8x128xf32>
    %215 = vector.shape_cast %212 : vector<8x128xf32> to vector<1x8x128xf32>
    tpu.vector_store %arg5[%c4_94, %c0_95, %c0_96], %215 {strides = array<i32>} : memref<8x8x128xf32, #tpu.memory_space<vmem>>, vector<1x8x128xf32>,
    %216 = arith.truncf %212 : vector<8x128xf32> to vector<8x128xbf16>
    %cst_97 = arith.constant dense<0.000000e+00> : vector<8x512xf32>
    %217 = tpu.matmul %216, %4, %cst_97 {dimension_numbers = #tpu.dot_dimension_numbers<[1], [0], [0], [1], [0, 0, 1, 1], [], []>} : vector<8x128xbf16>, vector<128x512xbf16>, vector<8x512xf32> -> vector<8x512xf32>
    %218 = arith.addf %22, %217 : vector<8x512xf32>
    %219 = vector.extract_strided_slice %218 {offsets = [0, 0], sizes = [8, 128], strides = [1, 1]} : vector<8x512xf32> to vector<8x128xf32>
    %cst_98 = arith.constant 5.000000e-01 : f32
    %220 = vector.broadcast %cst_98 : f32 to vector<8x128xf32>
    %221 = arith.mulf %220, %219 : vector<8x128xf32>
    %222 = math.tanh %221 : vector<8x128xf32>
    %cst_99 = arith.constant 1.000000e+00 : f32
    %223 = vector.broadcast %cst_99 : f32 to vector<8x128xf32>
    %224 = arith.addf %222, %223 : vector<8x128xf32>
    %cst_100 = arith.constant 5.000000e-01 : f32
    %225 = vector.broadcast %cst_100 : f32 to vector<8x128xf32>
    %226 = arith.mulf %225, %224 : vector<8x128xf32>
    %227 = vector.extract_strided_slice %218 {offsets = [0, 128], sizes = [8, 128], strides = [1, 1]} : vector<8x512xf32> to vector<8x128xf32>
    %cst_101 = arith.constant 5.000000e-01 : f32
    %228 = vector.broadcast %cst_101 : f32 to vector<8x128xf32>
    %229 = arith.mulf %228, %227 : vector<8x128xf32>
    %230 = math.tanh %229 : vector<8x128xf32>
    %cst_102 = arith.constant 1.000000e+00 : f32
    %231 = vector.broadcast %cst_102 : f32 to vector<8x128xf32>
    %232 = arith.addf %230, %231 : vector<8x128xf32>
    %cst_103 = arith.constant 5.000000e-01 : f32
    %233 = vector.broadcast %cst_103 : f32 to vector<8x128xf32>
    %234 = arith.mulf %233, %232 : vector<8x128xf32>
    %235 = vector.extract_strided_slice %218 {offsets = [0, 256], sizes = [8, 128], strides = [1, 1]} : vector<8x512xf32> to vector<8x128xf32>
    %cst_104 = arith.constant 5.000000e-01 : f32
    %236 = vector.broadcast %cst_104 : f32 to vector<8x128xf32>
    %237 = arith.mulf %236, %235 : vector<8x128xf32>
    %238 = math.tanh %237 : vector<8x128xf32>
    %cst_105 = arith.constant 1.000000e+00 : f32
    %239 = vector.broadcast %cst_105 : f32 to vector<8x128xf32>
    %240 = arith.addf %238, %239 : vector<8x128xf32>
    %cst_106 = arith.constant 5.000000e-01 : f32
    %241 = vector.broadcast %cst_106 : f32 to vector<8x128xf32>
    %242 = arith.mulf %241, %240 : vector<8x128xf32>
    %243 = vector.extract_strided_slice %218 {offsets = [0, 384], sizes = [8, 128], strides = [1, 1]} : vector<8x512xf32> to vector<8x128xf32>
    %244 = math.tanh %243 : vector<8x128xf32>
    %245 = arith.mulf %210, %226 : vector<8x128xf32>
    %246 = arith.mulf %234, %244 : vector<8x128xf32>
    %247 = arith.addf %245, %246 : vector<8x128xf32>
    %248 = math.tanh %247 : vector<8x128xf32>
    %249 = arith.mulf %242, %248 : vector<8x128xf32>
    %c5_107 = arith.constant 5 : index
    %c0_108 = arith.constant 0 : index
    %c0_109 = arith.constant 0 : index
    %250 = vector.load %arg5[%c5_107, %c0_108, %c0_109] : memref<8x8x128xf32, #tpu.memory_space<vmem>>, vector<1x8x128xf32>
    %251 = vector.shape_cast %250 : vector<1x8x128xf32> to vector<8x128xf32>
    %252 = vector.shape_cast %249 : vector<8x128xf32> to vector<1x8x128xf32>
    tpu.vector_store %arg5[%c5_107, %c0_108, %c0_109], %252 {strides = array<i32>} : memref<8x8x128xf32, #tpu.memory_space<vmem>>, vector<1x8x128xf32>,
    %253 = arith.truncf %249 : vector<8x128xf32> to vector<8x128xbf16>
    %cst_110 = arith.constant dense<0.000000e+00> : vector<8x512xf32>
    %254 = tpu.matmul %253, %4, %cst_110 {dimension_numbers = #tpu.dot_dimension_numbers<[1], [0], [0], [1], [0, 0, 1, 1], [], []>} : vector<8x128xbf16>, vector<128x512xbf16>, vector<8x512xf32> -> vector<8x512xf32>
    %255 = arith.addf %25, %254 : vector<8x512xf32>
    %256 = vector.extract_strided_slice %255 {offsets = [0, 0], sizes = [8, 128], strides = [1, 1]} : vector<8x512xf32> to vector<8x128xf32>
    %cst_111 = arith.constant 5.000000e-01 : f32
    %257 = vector.broadcast %cst_111 : f32 to vector<8x128xf32>
    %258 = arith.mulf %257, %256 : vector<8x128xf32>
    %259 = math.tanh %258 : vector<8x128xf32>
    %cst_112 = arith.constant 1.000000e+00 : f32
    %260 = vector.broadcast %cst_112 : f32 to vector<8x128xf32>
    %261 = arith.addf %259, %260 : vector<8x128xf32>
    %cst_113 = arith.constant 5.000000e-01 : f32
    %262 = vector.broadcast %cst_113 : f32 to vector<8x128xf32>
    %263 = arith.mulf %262, %261 : vector<8x128xf32>
    %264 = vector.extract_strided_slice %255 {offsets = [0, 128], sizes = [8, 128], strides = [1, 1]} : vector<8x512xf32> to vector<8x128xf32>
    %cst_114 = arith.constant 5.000000e-01 : f32
    %265 = vector.broadcast %cst_114 : f32 to vector<8x128xf32>
    %266 = arith.mulf %265, %264 : vector<8x128xf32>
    %267 = math.tanh %266 : vector<8x128xf32>
    %cst_115 = arith.constant 1.000000e+00 : f32
    %268 = vector.broadcast %cst_115 : f32 to vector<8x128xf32>
    %269 = arith.addf %267, %268 : vector<8x128xf32>
    %cst_116 = arith.constant 5.000000e-01 : f32
    %270 = vector.broadcast %cst_116 : f32 to vector<8x128xf32>
    %271 = arith.mulf %270, %269 : vector<8x128xf32>
    %272 = vector.extract_strided_slice %255 {offsets = [0, 256], sizes = [8, 128], strides = [1, 1]} : vector<8x512xf32> to vector<8x128xf32>
    %cst_117 = arith.constant 5.000000e-01 : f32
    %273 = vector.broadcast %cst_117 : f32 to vector<8x128xf32>
    %274 = arith.mulf %273, %272 : vector<8x128xf32>
    %275 = math.tanh %274 : vector<8x128xf32>
    %cst_118 = arith.constant 1.000000e+00 : f32
    %276 = vector.broadcast %cst_118 : f32 to vector<8x128xf32>
    %277 = arith.addf %275, %276 : vector<8x128xf32>
    %cst_119 = arith.constant 5.000000e-01 : f32
    %278 = vector.broadcast %cst_119 : f32 to vector<8x128xf32>
    %279 = arith.mulf %278, %277 : vector<8x128xf32>
    %280 = vector.extract_strided_slice %255 {offsets = [0, 384], sizes = [8, 128], strides = [1, 1]} : vector<8x512xf32> to vector<8x128xf32>
    %281 = math.tanh %280 : vector<8x128xf32>
    %282 = arith.mulf %247, %263 : vector<8x128xf32>
    %283 = arith.mulf %271, %281 : vector<8x128xf32>
    %284 = arith.addf %282, %283 : vector<8x128xf32>
    %285 = math.tanh %284 : vector<8x128xf32>
    %286 = arith.mulf %279, %285 : vector<8x128xf32>
    %c6_120 = arith.constant 6 : index
    %c0_121 = arith.constant 0 : index
    %c0_122 = arith.constant 0 : index
    %287 = vector.load %arg5[%c6_120, %c0_121, %c0_122] : memref<8x8x128xf32, #tpu.memory_space<vmem>>, vector<1x8x128xf32>
    %288 = vector.shape_cast %287 : vector<1x8x128xf32> to vector<8x128xf32>
    %289 = vector.shape_cast %286 : vector<8x128xf32> to vector<1x8x128xf32>
    tpu.vector_store %arg5[%c6_120, %c0_121, %c0_122], %289 {strides = array<i32>} : memref<8x8x128xf32, #tpu.memory_space<vmem>>, vector<1x8x128xf32>,
    %290 = arith.truncf %286 : vector<8x128xf32> to vector<8x128xbf16>
    %cst_123 = arith.constant dense<0.000000e+00> : vector<8x512xf32>
    %291 = tpu.matmul %290, %4, %cst_123 {dimension_numbers = #tpu.dot_dimension_numbers<[1], [0], [0], [1], [0, 0, 1, 1], [], []>} : vector<8x128xbf16>, vector<128x512xbf16>, vector<8x512xf32> -> vector<8x512xf32>
    %292 = arith.addf %28, %291 : vector<8x512xf32>
    %293 = vector.extract_strided_slice %292 {offsets = [0, 0], sizes = [8, 128], strides = [1, 1]} : vector<8x512xf32> to vector<8x128xf32>
    %cst_124 = arith.constant 5.000000e-01 : f32
    %294 = vector.broadcast %cst_124 : f32 to vector<8x128xf32>
    %295 = arith.mulf %294, %293 : vector<8x128xf32>
    %296 = math.tanh %295 : vector<8x128xf32>
    %cst_125 = arith.constant 1.000000e+00 : f32
    %297 = vector.broadcast %cst_125 : f32 to vector<8x128xf32>
    %298 = arith.addf %296, %297 : vector<8x128xf32>
    %cst_126 = arith.constant 5.000000e-01 : f32
    %299 = vector.broadcast %cst_126 : f32 to vector<8x128xf32>
    %300 = arith.mulf %299, %298 : vector<8x128xf32>
    %301 = vector.extract_strided_slice %292 {offsets = [0, 128], sizes = [8, 128], strides = [1, 1]} : vector<8x512xf32> to vector<8x128xf32>
    %cst_127 = arith.constant 5.000000e-01 : f32
    %302 = vector.broadcast %cst_127 : f32 to vector<8x128xf32>
    %303 = arith.mulf %302, %301 : vector<8x128xf32>
    %304 = math.tanh %303 : vector<8x128xf32>
    %cst_128 = arith.constant 1.000000e+00 : f32
    %305 = vector.broadcast %cst_128 : f32 to vector<8x128xf32>
    %306 = arith.addf %304, %305 : vector<8x128xf32>
    %cst_129 = arith.constant 5.000000e-01 : f32
    %307 = vector.broadcast %cst_129 : f32 to vector<8x128xf32>
    %308 = arith.mulf %307, %306 : vector<8x128xf32>
    %309 = vector.extract_strided_slice %292 {offsets = [0, 256], sizes = [8, 128], strides = [1, 1]} : vector<8x512xf32> to vector<8x128xf32>
    %cst_130 = arith.constant 5.000000e-01 : f32
    %310 = vector.broadcast %cst_130 : f32 to vector<8x128xf32>
    %311 = arith.mulf %310, %309 : vector<8x128xf32>
    %312 = math.tanh %311 : vector<8x128xf32>
    %cst_131 = arith.constant 1.000000e+00 : f32
    %313 = vector.broadcast %cst_131 : f32 to vector<8x128xf32>
    %314 = arith.addf %312, %313 : vector<8x128xf32>
    %cst_132 = arith.constant 5.000000e-01 : f32
    %315 = vector.broadcast %cst_132 : f32 to vector<8x128xf32>
    %316 = arith.mulf %315, %314 : vector<8x128xf32>
    %317 = vector.extract_strided_slice %292 {offsets = [0, 384], sizes = [8, 128], strides = [1, 1]} : vector<8x512xf32> to vector<8x128xf32>
    %318 = math.tanh %317 : vector<8x128xf32>
    %319 = arith.mulf %284, %300 : vector<8x128xf32>
    %320 = arith.mulf %308, %318 : vector<8x128xf32>
    %321 = arith.addf %319, %320 : vector<8x128xf32>
    %322 = math.tanh %321 : vector<8x128xf32>
    %323 = arith.mulf %316, %322 : vector<8x128xf32>
    %c7_133 = arith.constant 7 : index
    %c0_134 = arith.constant 0 : index
    %c0_135 = arith.constant 0 : index
    %324 = vector.load %arg5[%c7_133, %c0_134, %c0_135] : memref<8x8x128xf32, #tpu.memory_space<vmem>>, vector<1x8x128xf32>
    %325 = vector.shape_cast %324 : vector<1x8x128xf32> to vector<8x128xf32>
    %326 = vector.shape_cast %323 : vector<8x128xf32> to vector<1x8x128xf32>
    tpu.vector_store %arg5[%c7_133, %c0_134, %c0_135], %326 {strides = array<i32>} : memref<8x8x128xf32, #tpu.memory_space<vmem>>, vector<1x8x128xf32>,
    %c0_136 = arith.constant 0 : index
    %c0_137 = arith.constant 0 : index
    %327 = vector.load %arg8[%c0_136, %c0_137] : memref<8x128xf32, #tpu.memory_space<vmem>>, vector<8x128xf32>
    tpu.vector_store %arg8[%c0_136, %c0_137], %323 {strides = array<i32>} : memref<8x128xf32, #tpu.memory_space<vmem>>, vector<8x128xf32>,
    %c0_138 = arith.constant 0 : index
    %c0_139 = arith.constant 0 : index
    %328 = vector.load %arg9[%c0_138, %c0_139] : memref<8x128xf32, #tpu.memory_space<vmem>>, vector<8x128xf32>
    tpu.vector_store %arg9[%c0_138, %c0_139], %321 {strides = array<i32>} : memref<8x128xf32, #tpu.memory_space<vmem>>, vector<8x128xf32>,
    %c0_140 = arith.constant 0 : index
    %c0_141 = arith.constant 0 : index
    %329 = vector.load %arg6[%c0_140, %c0_141] : memref<8x128xf32, #tpu.memory_space<vmem>>, vector<8x128xf32>
    tpu.vector_store %arg6[%c0_140, %c0_141], %323 {strides = array<i32>} : memref<8x128xf32, #tpu.memory_space<vmem>>, vector<8x128xf32>,
    %c0_142 = arith.constant 0 : index
    %c0_143 = arith.constant 0 : index
    %330 = vector.load %arg7[%c0_142, %c0_143] : memref<8x128xf32, #tpu.memory_space<vmem>>, vector<8x128xf32>
    tpu.vector_store %arg7[%c0_142, %c0_143], %321 {strides = array<i32>} : memref<8x128xf32, #tpu.memory_space<vmem>>, vector<8x128xf32>,
    return
  }
  func.func @transform_0(%arg0: i32, %arg1: i32) -> (i32, i32, i32) {
    %c0_i32 = arith.constant 0 : i32
    %c0_i32_0 = arith.constant 0 : i32
    return %arg1, %arg0, %c0_i32 : i32, i32, i32
  }
  func.func @transform_1(%arg0: i32, %arg1: i32) -> (i32, i32) {
    %c0_i32 = arith.constant 0 : i32
    %c0_i32_0 = arith.constant 0 : i32
    %c0_i32_1 = arith.constant 0 : i32
    return %c0_i32, %c0_i32_0 : i32, i32
  }
  func.func @transform_2(%arg0: i32, %arg1: i32) -> (i32, i32) {
    %c0_i32 = arith.constant 0 : i32
    %c0_i32_0 = arith.constant 0 : i32
    %c0_i32_1 = arith.constant 0 : i32
    return %c0_i32, %c0_i32_0 : i32, i32
  }
  func.func @transform_3(%arg0: i32, %arg1: i32) -> (i32, i32, i32) {
    %c0_i32 = arith.constant 0 : i32
    %c0_i32_0 = arith.constant 0 : i32
    return %arg1, %arg0, %c0_i32 : i32, i32, i32
  }
  func.func @transform_4(%arg0: i32, %arg1: i32) -> (i32, i32) {
    %c0_i32 = arith.constant 0 : i32
    %c0_i32_0 = arith.constant 0 : i32
    return %arg0, %c0_i32 : i32, i32
  }
  func.func @transform_5(%arg0: i32, %arg1: i32) -> (i32, i32) {
    %c0_i32 = arith.constant 0 : i32
    %c0_i32_0 = arith.constant 0 : i32
    return %arg0, %c0_i32 : i32, i32
  }
}

</mosaic_0001>

<bundles_post_ra>
// kernel: tpu_custom_call.1
= control target key start
LH: loop header
LB: loop body
LE: loop exit
PB: predicated region body
PF: predicated region fallthrough
CT: control target
= control target key end

     0   :  { %11 = vsyncpa [#allocation5], 0  ;;  %s2825_s0 = inlined_call_operand.hbm [shape: bf16[8,8,16], index: 0, kind: input, shape index: {}]   ;;  %s2826_s1 = inlined_call_operand.hbm [shape: bf16[16,512], index: 1, kind: input, shape index: {}]   ;;  %s2827_s2 = inlined_call_operand.hbm [shape: bf16[128,512], index: 2, kind: input, shape index: {}]   ;;  %s2828_s3 = inlined_call_operand.hbm [shape: f32[8,8,128], index: 3, kind: output, shape index: {0}]   ;;  %s2829_s4 = inlined_call_operand.hbm [shape: f32[8,128], index: 4, kind: output, shape index: {1}]   ;;  %s2830_s5 = inlined_call_operand.hbm [shape: f32[8,128], index: 5, kind: output, shape index: {2}]  }
   0x1   :  { %12 = vsyncpa [#allocation8], 0 }
   0x2   :  { %13 = vsyncpa [#allocation6], 0 }
   0x3   :  { %14 = vsyncpa [#allocation12], 0  ;;  %s2293_s18 = smov [#allocation7]   ;;  %s2153_s22 = scalar_lea.hbm %s2826_s1, 512 }
   0x4   :  { %s32_s19 = sshll.u32 %s2293_s18, 4  ;;  %p2154_p0 = scmp.ne.s32.totalorder %s2826_s1, %s2153_s22  ;;  %s33_s19 = int_to_ptr.vmem [resolvable:$true] %s32_s19 }
   0x5   :  { %p2157_p1 = scmp.lt.u32.totalorder %s2153_s22, %s2826_s1 }
   0x7   :  { %p2159_p2 = pnand %p2157_p1, %p2154_p0 }
   0x9   :  { %2162 = shalt.err (!%p2159_p2)
}
   0xa   :  { %s2163_s27 = scalar_lea.vmem %s33_s19, 512  ;;  %p2168_p4 = scmp.lt.s32.totalorder %s33_s19, %s33_s19 }
   0xb   :  { %p2164_p3 = scmp.ne.s32.totalorder %s33_s19, %s2163_s27  ;;  %p2169_p5 = scmp.lt.s32.totalorder %s2163_s27, %s2163_s27 }
   0xd   :  { %p2170_p6 = por %p2169_p5, %p2168_p4 }
   0xf   :  { %p2171_p7 = pnand %p2170_p6, %p2164_p3 }
  0x11   :  { %2174 = shalt.err (!%p2171_p7)
}
  0x12   :  { %s2294_s28 = smov 256   ;;  %s2295_s29 = smov 16  }
  0x13   :  { %38 = dma.hbm_to_vmem [thread:$0]  %s2826_s1, 512, %s33_s19, [#allocation8], %s2294_s28, %s2294_s28, %s2295_s29  }
  0x14   :  { %s2296_s7 = smov [#allocation4]   ;;  %s2175_s11 = scalar_lea.hbm %s2825_s0, 512 }
  0x15   :  { %s20_s8 = sshll.u32 %s2296_s7, 4  ;;  %p2176_p8 = scmp.ne.s32.totalorder %s2825_s0, %s2175_s11  ;;  %s21_s8 = int_to_ptr.vmem [resolvable:$true] %s20_s8 }
  0x16   :  { %p2179_p9 = scmp.lt.u32.totalorder %s2175_s11, %s2825_s0 }
  0x18   :  { %p2181_p10 = pnand %p2179_p9, %p2176_p8 }
  0x1a   :  { %2184 = shalt.err (!%p2181_p10)
}
  0x1b   :  { %s2185_s16 = scalar_lea.vmem %s21_s8, 512  ;;  %p2190_p12 = scmp.lt.s32.totalorder %s21_s8, %s21_s8 }
  0x1c   :  { %p2186_p11 = scmp.ne.s32.totalorder %s21_s8, %s2185_s16  ;;  %p2191_p13 = scmp.lt.s32.totalorder %s2185_s16, %s2185_s16 }
  0x1e   :  { %p2192_p0 = por %p2191_p13, %p2190_p12 }
  0x20   :  { %p2193_p1 = pnand %p2192_p0, %p2186_p11 }
  0x22   :  { %2196 = shalt.err (!%p2193_p1)
}
  0x23   :  { %s2297_s1 = smov 64   ;;  %s2298_s17 = smov 4  }
  0x24   :  { %26 = dma.hbm_to_vmem [thread:$0]  %s2825_s0, 512, %s21_s8, [#allocation5], %s2297_s1, %s2297_s1, %s2298_s17  }
  0x25   :  { %s2299_s20 = smov [#allocation9]   ;;  %s2197_s24 = scalar_lea.hbm %s2827_s2, 4096 }
  0x26   :  { %s44_s21 = sshll.u32 %s2299_s20, 4  ;;  %p2198_p2 = scmp.ne.s32.totalorder %s2827_s2, %s2197_s24  ;;  %s45_s21 = int_to_ptr.vmem [resolvable:$true] %s44_s21 }
  0x27   :  { %p2201_p3 = scmp.lt.u32.totalorder %s2197_s24, %s2827_s2 }
  0x29   :  { %p2203_p4 = pnand %p2201_p3, %p2198_p2 }
  0x2b   :  { %2206 = shalt.err (!%p2203_p4)
}
  0x2c   :  { %s2207_s6 = scalar_lea.vmem %s45_s21, 4096  ;;  %p2212_p6 = scmp.lt.s32.totalorder %s45_s21, %s45_s21 }
  0x2d   :  { %p2208_p5 = scmp.ne.s32.totalorder %s45_s21, %s2207_s6  ;;  %p2213_p7 = scmp.lt.s32.totalorder %s2207_s6, %s2207_s6 }
  0x2f   :  { %p2214_p8 = por %p2213_p7, %p2212_p6 }
  0x31   :  { %p2215_p9 = pnand %p2214_p8, %p2208_p5 }
  0x33   :  { %2218 = shalt.err (!%p2215_p9)
}
  0x34   :  { %50 = dma.hbm_to_vmem [thread:$0]  %s2827_s2, 4096, %s45_s21, [#allocation8], %s2294_s28, %s2294_s28, %s2295_s29  }
  0x35   :  { %2285 = dma.done.wait [#allocation5], 512  }
  0x36   :  { %2286 = vsyncadd [#allocation5], 4294966784 }
  0x37   :  { %2287 = dma.done.wait [#allocation8], 4608  }
  0x38   :  { %2288 = vsyncadd [#allocation8], 4294962688  ;;  %v2300_v0 = vmov 0   ;;  %v2381_v1 = vld [vmem:[#allocation9 + $0x4] ss:$16 sps:$4 sm:$0xff]   ;;  %v2301_v37 = vmov 0.0|0.0  }
  0x39   :  { %313 = vmatprep.mubr.bf16.mxu0 %v2300_v0  ;;  %354 = vmatprep.mubr.bf16.mxu1 %v2300_v0  ;;  %v2383_v2 = vld [vmem:[#allocation9 + $0xc] ss:$16 sps:$4 sm:$0xff]   ;;  %v2386_v3 = vld [vmem:[#allocation9] ss:$16 sps:$4 sm:$0xff]   ;;  %v2388_v4 = vld [vmem:[#allocation9 + $0x8] ss:$16 sps:$4 sm:$0xff]  }
  0x3a   :  { %281 = vmatprep.subr.bf16.mxu0 %v2381_v1  ;;  %322 = vmatprep.subr.bf16.mxu1 %v2383_v2  ;;  %v2391_v5 = vld [vmem:[#allocation9 + $0x24] ss:$16 sps:$4 sm:$0xff]   ;;  %v2395_v6 = vld [vmem:[#allocation9 + $0x2c] ss:$16 sps:$4 sm:$0xff]   ;;  %v2397_v7 = vld [vmem:[#allocation9 + $0x20] ss:$16 sps:$4 sm:$0xff]  }
  0x3b   :  { %282 = vmatpush1.bf16.msra.mxu0 %v2386_v3  ;;  %323 = vmatpush1.bf16.msra.mxu1 %v2388_v4  ;;  %v2400_v8 = vld [vmem:[#allocation9 + $0x28] ss:$16 sps:$4 sm:$0xff]   ;;  %v2403_v9 = vld [vmem:[#allocation9 + $0x44] ss:$16 sps:$4 sm:$0xff]   ;;  %v2405_v10 = vld [vmem:[#allocation9 + $0x4c] ss:$16 sps:$4 sm:$0xff]  }
  0x3c   :  { %283 = vmatprep.subr.bf16.mxu0 %v2391_v5  ;;  %324 = vmatprep.subr.bf16.mxu1 %v2395_v6  ;;  %v2407_v11 = vld [vmem:[#allocation9 + $0x40] ss:$16 sps:$4 sm:$0xff]   ;;  %v2409_v12 = vld [vmem:[#allocation9 + $0x48] ss:$16 sps:$4 sm:$0xff]   ;;  %v2413_v13 = vld [vmem:[#allocation9 + $0x64] ss:$16 sps:$4 sm:$0xff]  }
  0x3d   :  { %v2417_v14 = vld [vmem:[#allocation9 + $0x6c] ss:$16 sps:$4 sm:$0xff]   ;;  %v2419_v15 = vld [vmem:[#allocation9 + $0x60] ss:$16 sps:$4 sm:$0xff]   ;;  %v2423_v16 = vld [vmem:[#allocation9 + $0x68] ss:$16 sps:$4 sm:$0xff]  }
  0x3e   :  { %v2425_v17 = vld [vmem:[#allocation9 + $0x84] ss:$16 sps:$4 sm:$0xff]   ;;  %v2429_v18 = vld [vmem:[#allocation9 + $0x8c] ss:$16 sps:$4 sm:$0xff]   ;;  %v2431_v19 = vld [vmem:[#allocation9 + $0x80] ss:$16 sps:$4 sm:$0xff]  }
  0x3f   :  { %284 = vmatpush1.bf16.msra.mxu0 %v2397_v7  ;;  %325 = vmatpush1.bf16.msra.mxu1 %v2400_v8  ;;  %v2433_v20 = vld [vmem:[#allocation9 + $0x88] ss:$16 sps:$4 sm:$0xff]   ;;  %v2437_v21 = vld [vmem:[#allocation9 + $0xa4] ss:$16 sps:$4 sm:$0xff]   ;;  %v2441_v22 = vld [vmem:[#allocation9 + $0xac] ss:$16 sps:$4 sm:$0xff]  }
  0x40   :  { %285 = vmatprep.subr.bf16.mxu0 %v2403_v9  ;;  %326 = vmatprep.subr.bf16.mxu1 %v2405_v10  ;;  %v2443_v23 = vld [vmem:[#allocation9 + $0xa0] ss:$16 sps:$4 sm:$0xff]   ;;  %v2447_v24 = vld [vmem:[#allocation9 + $0xa8] ss:$16 sps:$4 sm:$0xff]   ;;  %v2449_v25 = vld [vmem:[#allocation9 + $0xc4] ss:$16 sps:$4 sm:$0xff]  }
  0x41   :  { %v2453_v26 = vld [vmem:[#allocation9 + $0xcc] ss:$16 sps:$4 sm:$0xff]   ;;  %v2457_v27 = vld [vmem:[#allocation9 + $0xc0] ss:$16 sps:$4 sm:$0xff]   ;;  %v2459_v28 = vld [vmem:[#allocation9 + $0xc8] ss:$16 sps:$4 sm:$0xff]  }
  0x42   :  { %v2463_v29 = vld [vmem:[#allocation9 + $0xe4] ss:$16 sps:$4 sm:$0xff]   ;;  %v2465_v30 = vld [vmem:[#allocation9 + $0xec] ss:$16 sps:$4 sm:$0xff]   ;;  %v2469_v31 = vld [vmem:[#allocation9 + $0xe0] ss:$16 sps:$4 sm:$0xff]  }
  0x43   :  { %286 = vmatpush1.bf16.msra.mxu0 %v2407_v11  ;;  %327 = vmatpush1.bf16.msra.mxu1 %v2409_v12  ;;  %v2471_v32 = vld [vmem:[#allocation9 + $0xe8] ss:$16 sps:$4 sm:$0xff]   ;;  %v2475_v33 = vld [vmem:[#allocation7 + $0x4] ss:$16 sps:$4 sm:$0xff]   ;;  %v2477_v34 = vld [vmem:[#allocation7 + $0xc] ss:$16 sps:$4 sm:$0xff]  }
  0x44   :  { %287 = vmatprep.subr.bf16.mxu0 %v2413_v13  ;;  %328 = vmatprep.subr.bf16.mxu1 %v2417_v14  ;;  %v2481_v35 = vld [vmem:[#allocation7] ss:$16 sps:$4 sm:$0xff]   ;;  %v2483_v36 = vld [vmem:[#allocation7 + $0x8] ss:$16 sps:$4 sm:$0xff]   ;;  %vm383_vm0 = vcmask 130048   ;;  %s2302_s2 = smov [#allocation11]  }
  0x45   :  { %v103_v38 = vld [vmem:[#allocation4] sm:$0xf]  ;;  %s1826_s28 = sshll.u32 %s2302_s2, 4  ;;  %s2303_s29 = smov [#allocation10]   ;;  %s1827_s28 = int_to_ptr.vmem [resolvable:$true] %s1826_s28 }
  0x46   :  { %s1813_s8 = sshll.u32 %s2303_s29, 4  ;;  %s2304_s9 = smov [#allocation13]   ;;  %s2775_s8 = int_to_ptr.vmem [resolvable:$true] %s1813_s8 }
  0x47   :  { %288 = vmatpush1.bf16.msra.mxu0 %v2419_v15  ;;  %329 = vmatpush1.bf16.msra.mxu1 %v2423_v16  ;;  %s1836_s10 = sshll.u32 %s2304_s9, 4  ;;  %s2219_s11 = scalar_lea.vmem %s1827_s28, 128  ;;  %s2777_s10 = int_to_ptr.vmem [resolvable:$true] %s1836_s10 }
  0x48   :  { %289 = vmatprep.subr.bf16.mxu0 %v2425_v17  ;;  %330 = vmatprep.subr.bf16.mxu1 %v2429_v18  ;;  %p2220_p10 = scmp.ne.s32.totalorder %s1827_s28, %s2219_s11  ;;  %p2224_p11 = scmp.lt.s32.totalorder %s1827_s28, %s1827_s28 }
  0x49   :  { %p2225_p12 = scmp.lt.s32.totalorder %s2219_s11, %s2219_s11 }
  0x4b   :  { %290 = vmatpush1.bf16.msra.mxu0 %v2431_v19  ;;  %331 = vmatpush1.bf16.msra.mxu1 %v2433_v20  ;;  %p2226_p13 = por %p2225_p12, %p2224_p11 }
  0x4c   :  { %291 = vmatprep.subr.bf16.mxu0 %v2437_v21  ;;  %332 = vmatprep.subr.bf16.mxu1 %v2441_v22 }
  0x4d   :  { %p2227_p0 = pnand %p2226_p13, %p2220_p10 }
  0x4f   :  { %292 = vmatpush1.bf16.msra.mxu0 %v2443_v23  ;;  %333 = vmatpush1.bf16.msra.mxu1 %v2447_v24 }
  0x50   :  { %293 = vmatprep.subr.bf16.mxu0 %v2449_v25  ;;  %334 = vmatprep.subr.bf16.mxu1 %v2453_v26 }
  0x53   :  { %294 = vmatpush1.bf16.msra.mxu0 %v2457_v27  ;;  %335 = vmatpush1.bf16.msra.mxu1 %v2459_v28 }
  0x54   :  { %295 = vmatprep.subr.bf16.mxu0 %v2463_v29  ;;  %336 = vmatprep.subr.bf16.mxu1 %v2465_v30 }
  0x57   :  { %296 = vmatpush1.bf16.msra.mxu0 %v2469_v31  ;;  %337 = vmatpush1.bf16.msra.mxu1 %v2471_v32 }
  0x58   :  { %387 = vmatprep.subr.bf16.mxu0 %v2475_v33  ;;  %428 = vmatprep.subr.bf16.mxu1 %v2477_v34 }
  0x5a   :  { %314 = vmatmul.mubr.bf16.vlgmr.msra.gmra.mrb[0].mxu0 %v2301_v37  ;;  %355 = vmatmul.mubr.bf16.vlgmr.msra.gmra.mrb[0].mxu1 %v2301_v37 }
  0x5b   :  { %388 = vmatpush1.bf16.msra.mxu0 %v2481_v35  ;;  %429 = vmatpush1.bf16.msra.mxu1 %v2483_v36 }
  0x5c   :  { %419 = vmatprep.mubr.bf16.mxu0 %v2300_v0  ;;  %460 = vmatprep.mubr.bf16.mxu1 %v2300_v0 }
  0x5d   :  { %489 = vmatprep.subr.bf16.mxu0 %v2381_v1  ;;  %530 = vmatprep.subr.bf16.mxu1 %v2383_v2 }
  0x66   :  { %1889 = vmatmul.mubr.msk.bf16.vlgmr.msra.gmra.mrb[0].mxu0 %vm383_vm0, %v103_v38  ;;  %1890 = vmatmul.mubr.msk.bf16.vlgmr.msra.gmra.mrb[0].mxu1 %vm383_vm0, %v103_v38 }
  0x67   :  { %490 = vmatpush1.bf16.msra.mxu0 %v2386_v3  ;;  %531 = vmatpush1.bf16.msra.mxu1 %v2388_v4 }
  0x68   :  { %491 = vmatprep.subr.bf16.mxu0 %v2391_v5  ;;  %532 = vmatprep.subr.bf16.mxu1 %v2395_v6 }
  0x69   :  { %521 = vmatprep.mubr.bf16.mxu0 %v2300_v0  ;;  %562 = vmatprep.mubr.bf16.mxu1 %v2300_v0 }
  0x6b   :  { %492 = vmatpush1.bf16.msra.mxu0 %v2397_v7  ;;  %533 = vmatpush1.bf16.msra.mxu1 %v2400_v8 }
  0x6c   :  { %493 = vmatprep.subr.bf16.mxu0 %v2403_v9  ;;  %534 = vmatprep.subr.bf16.mxu1 %v2405_v10 }
  0x6f   :  { %494 = vmatpush1.bf16.msra.mxu0 %v2407_v11  ;;  %535 = vmatpush1.bf16.msra.mxu1 %v2409_v12 }
  0x70   :  { %495 = vmatprep.subr.bf16.mxu0 %v2413_v13  ;;  %536 = vmatprep.subr.bf16.mxu1 %v2417_v14 }
  0x73   :  { %496 = vmatpush1.bf16.msra.mxu0 %v2419_v15  ;;  %537 = vmatpush1.bf16.msra.mxu1 %v2423_v16 }
  0x74   :  { %497 = vmatprep.subr.bf16.mxu0 %v2425_v17  ;;  %538 = vmatprep.subr.bf16.mxu1 %v2429_v18 }
  0x77   :  { %498 = vmatpush1.bf16.msra.mxu0 %v2431_v19  ;;  %539 = vmatpush1.bf16.msra.mxu1 %v2433_v20 }
  0x78   :  { %499 = vmatprep.subr.bf16.mxu0 %v2437_v21  ;;  %540 = vmatprep.subr.bf16.mxu1 %v2441_v22 }
  0x7b   :  { %500 = vmatpush1.bf16.msra.mxu0 %v2443_v23  ;;  %541 = vmatpush1.bf16.msra.mxu1 %v2447_v24 }
  0x7c   :  { %501 = vmatprep.subr.bf16.mxu0 %v2449_v25  ;;  %542 = vmatprep.subr.bf16.mxu1 %v2453_v26 }
  0x7f   :  { %502 = vmatpush1.bf16.msra.mxu0 %v2457_v27  ;;  %543 = vmatpush1.bf16.msra.mxu1 %v2459_v28 }
  0x80   :  { %503 = vmatprep.subr.bf16.mxu0 %v2463_v29  ;;  %544 = vmatprep.subr.bf16.mxu1 %v2465_v30 }
  0x83   :  { %504 = vmatpush1.bf16.msra.mxu0 %v2469_v31  ;;  %545 = vmatpush1.bf16.msra.mxu1 %v2471_v32 }
  0x84   :  { %574 = vmatprep.subr.bf16.mxu0 %v2475_v33  ;;  %615 = vmatprep.subr.bf16.mxu1 %v2477_v34 }
 0x139   :  { %v421_v39 = vpop.f32.mrb[0].mxu0  ;;  %v462_v40 = vpop.f32.mrb[0].mxu1 }
 0x13a   :  { %v469_v41 = vmul.f32 0.5, %v421_v39  ;;  %v423_v42 = vpop.f32.mrb[1].mxu0  ;;  %v464_v43 = vpop.f32.mrb[1].mxu1  ;;  %v477_v49 = vmul.f32 0.5, %v462_v40  ;;  %v105_v39 = vld [vmem:[#allocation4 + $0x4] sm:$0xf] }
 0x13b   :  { %v473_v44 = vmul.f32 0.5, %v423_v42  ;;  %v425_v45 = vpop.f32.mrb[2].mxu0  ;;  %v466_v46 = vpop.f32.mrb[2].mxu1 }
 0x13c   :  { %2037 = vtanh.f32 %v469_v41  ;;  %v426_v47 = vpop.f32.mrb[3].mxu0  ;;  %v467_v48 = vpop.f32.mrb[3].mxu1 }
 0x13d   :  { %2039 = vtanh.f32 %v473_v44 }
 0x13e   :  { %2041 = vtanh.f32 %v464_v43 }
 0x13f   :  { %2043 = vtanh.f32 %v477_v49 }
 0x146   :  { %v2038_v50 = vpop.eup %2037 }
 0x147   :  { %v471_v51 = vadd.f32 1.0, %v2038_v50  ;;  %v2040_v52 = vpop.eup %2039 }
 0x148   :  { %v475_v54 = vadd.f32 1.0, %v2040_v52  ;;  %v2042_v57 = vpop.eup %2041 }
 0x149   :  { %v472_v53 = vmul.f32 0.5, %v471_v51  ;;  %v2044_v60 = vpop.eup %2043 }
 0x14a   :  { %v476_v56 = vmul.f32 0.5, %v475_v54  ;;  %v479_v61 = vadd.f32 1.0, %v2044_v60 }
 0x14b   :  { %v482_v55 = vmul.f32 0.0, %v472_v53 }
 0x14c   :  { %v483_v58 = vmul.f32 %v2042_v57, %v476_v56  ;;  %v480_v62 = vmul.f32 0.5, %v479_v61 }
 0x14e   :  { %v2529_v59 = vadd.f32 %v483_v58, %v482_v55 }
 0x150   :  { %2045 = vtanh.f32 %v2529_v59 }
 0x15a   :  { %v2046_v63 = vpop.eup %2045 }
 0x15b   :  { %v486_v37 = vmul.f32 %v2046_v63, %v480_v62 }
 0x15d   :  { %487 = vst [vmem:[#allocation10] sm:$0xff] %v486_v37  ;;  %v488_v38 = vpack.c.bf16 %v486_v37, %v486_v37 }
 0x15f   :  { %522 = vmatmul.mubr.bf16.vlgmr.msra.gmra.mrb[4].mxu0 %v488_v38  ;;  %563 = vmatmul.mubr.bf16.vlgmr.msra.gmra.mrb[4].mxu1 %v488_v38 }
 0x160   :  { %575 = vmatpush1.bf16.msra.mxu0 %v2481_v35  ;;  %616 = vmatpush1.bf16.msra.mxu1 %v2483_v36 }
 0x161   :  { %606 = vmatprep.mubr.bf16.mxu0 %v2300_v0  ;;  %647 = vmatprep.mubr.bf16.mxu1 %v2300_v0 }
 0x162   :  { %677 = vmatprep.subr.bf16.mxu0 %v2381_v1  ;;  %718 = vmatprep.subr.bf16.mxu1 %v2383_v2 }
 0x16b   :  { %1891 = vmatmul.mubr.msk.bf16.vlgmr.msra.gmra.mrb[4].mxu0 %vm383_vm0, %v105_v39  ;;  %1892 = vmatmul.mubr.msk.bf16.vlgmr.msra.gmra.mrb[4].mxu1 %vm383_vm0, %v105_v39 }
 0x16c   :  { %678 = vmatpush1.bf16.msra.mxu0 %v2386_v3  ;;  %719 = vmatpush1.bf16.msra.mxu1 %v2388_v4 }
 0x16d   :  { %679 = vmatprep.subr.bf16.mxu0 %v2391_v5  ;;  %720 = vmatprep.subr.bf16.mxu1 %v2395_v6 }
 0x16e   :  { %709 = vmatprep.mubr.bf16.mxu0 %v2300_v0  ;;  %750 = vmatprep.mubr.bf16.mxu1 %v2300_v0 }
 0x170   :  { %680 = vmatpush1.bf16.msra.mxu0 %v2397_v7  ;;  %721 = vmatpush1.bf16.msra.mxu1 %v2400_v8 }
 0x171   :  { %681 = vmatprep.subr.bf16.mxu0 %v2403_v9  ;;  %722 = vmatprep.subr.bf16.mxu1 %v2405_v10 }
 0x174   :  { %682 = vmatpush1.bf16.msra.mxu0 %v2407_v11  ;;  %723 = vmatpush1.bf16.msra.mxu1 %v2409_v12 }
 0x175   :  { %683 = vmatprep.subr.bf16.mxu0 %v2413_v13  ;;  %724 = vmatprep.subr.bf16.mxu1 %v2417_v14 }
 0x178   :  { %684 = vmatpush1.bf16.msra.mxu0 %v2419_v15  ;;  %725 = vmatpush1.bf16.msra.mxu1 %v2423_v16 }
 0x179   :  { %685 = vmatprep.subr.bf16.mxu0 %v2425_v17  ;;  %726 = vmatprep.subr.bf16.mxu1 %v2429_v18 }
 0x17c   :  { %686 = vmatpush1.bf16.msra.mxu0 %v2431_v19  ;;  %727 = vmatpush1.bf16.msra.mxu1 %v2433_v20 }
 0x17d   :  { %687 = vmatprep.subr.bf16.mxu0 %v2437_v21  ;;  %728 = vmatprep.subr.bf16.mxu1 %v2441_v22 }
 0x180   :  { %688 = vmatpush1.bf16.msra.mxu0 %v2443_v23  ;;  %729 = vmatpush1.bf16.msra.mxu1 %v2447_v24 }
 0x181   :  { %689 = vmatprep.subr.bf16.mxu0 %v2449_v25  ;;  %730 = vmatprep.subr.bf16.mxu1 %v2453_v26 }
 0x184   :  { %690 = vmatpush1.bf16.msra.mxu0 %v2457_v27  ;;  %731 = vmatpush1.bf16.msra.mxu1 %v2459_v28 }
 0x185   :  { %691 = vmatprep.subr.bf16.mxu0 %v2463_v29  ;;  %732 = vmatprep.subr.bf16.mxu1 %v2465_v30 }
 0x188   :  { %692 = vmatpush1.bf16.msra.mxu0 %v2469_v31  ;;  %733 = vmatpush1.bf16.msra.mxu1 %v2471_v32 }
 0x189   :  { %762 = vmatprep.subr.bf16.mxu0 %v2475_v33  ;;  %803 = vmatprep.subr.bf16.mxu1 %v2477_v34 }
 0x23e   :  { %v608_v40 = vpop.f32.mrb[4].mxu0  ;;  %v649_v41 = vpop.f32.mrb[4].mxu1 }
 0x23f   :  { %v656_v42 = vmul.f32 0.5, %v608_v40  ;;  %v610_v43 = vpop.f32.mrb[5].mxu0  ;;  %v651_v44 = vpop.f32.mrb[5].mxu1  ;;  %v664_v50 = vmul.f32 0.5, %v649_v41 }
 0x240   :  { %v660_v45 = vmul.f32 0.5, %v610_v43  ;;  %v612_v46 = vpop.f32.mrb[6].mxu0  ;;  %v653_v47 = vpop.f32.mrb[6].mxu1 }
 0x241   :  { %2047 = vtanh.f32 %v656_v42  ;;  %v613_v48 = vpop.f32.mrb[7].mxu0  ;;  %v654_v49 = vpop.f32.mrb[7].mxu1 }
 0x242   :  { %2049 = vtanh.f32 %v660_v45 }
 0x243   :  { %2051 = vtanh.f32 %v651_v44 }
 0x244   :  { %2053 = vtanh.f32 %v664_v50 }
 0x24b   :  { %v2048_v51 = vpop.eup %2047 }
 0x24c   :  { %v658_v52 = vadd.f32 1.0, %v2048_v51  ;;  %v2050_v53 = vpop.eup %2049 }
 0x24d   :  { %v662_v55 = vadd.f32 1.0, %v2050_v53  ;;  %v2052_v58 = vpop.eup %2051 }
 0x24e   :  { %v659_v54 = vmul.f32 0.5, %v658_v52  ;;  %v2054_v62 = vpop.eup %2053 }
 0x24f   :  { %v663_v57 = vmul.f32 0.5, %v662_v55  ;;  %v666_v63 = vadd.f32 1.0, %v2054_v62 }
 0x250   :  { %v669_v56 = vmul.f32 %v659_v54, %v2529_v59  ;;  %v107_v59 = vld [vmem:[#allocation4 + $0x8] sm:$0xf] }
 0x251   :  { %v670_v60 = vmul.f32 %v2052_v58, %v663_v57  ;;  %v667_v37 = vmul.f32 0.5, %v666_v63 }
 0x253   :  { %v2575_v61 = vadd.f32 %v670_v60, %v669_v56 }
 0x255   :  { %2055 = vtanh.f32 %v2575_v61 }
 0x25f   :  { %v2056_v38 = vpop.eup %2055 }
 0x260   :  { %v673_v39 = vmul.f32 %v2056_v38, %v667_v37 }
 0x262   :  { %675 = vst [vmem:[#allocation10 + $0x8] sm:$0xff] %v673_v39  ;;  %v676_v40 = vpack.c.bf16 %v673_v39, %v673_v39 }
 0x264   :  { %710 = vmatmul.mubr.bf16.vlgmr.msra.gmra.mrb[8].mxu0 %v676_v40  ;;  %751 = vmatmul.mubr.bf16.vlgmr.msra.gmra.mrb[8].mxu1 %v676_v40 }
 0x265   :  { %763 = vmatpush1.bf16.msra.mxu0 %v2481_v35  ;;  %804 = vmatpush1.bf16.msra.mxu1 %v2483_v36 }
 0x266   :  { %794 = vmatprep.mubr.bf16.mxu0 %v2300_v0  ;;  %835 = vmatprep.mubr.bf16.mxu1 %v2300_v0 }
 0x267   :  { %865 = vmatprep.subr.bf16.mxu0 %v2381_v1  ;;  %906 = vmatprep.subr.bf16.mxu1 %v2383_v2 }
 0x270   :  { %1893 = vmatmul.mubr.msk.bf16.vlgmr.msra.gmra.mrb[8].mxu0 %vm383_vm0, %v107_v59  ;;  %1894 = vmatmul.mubr.msk.bf16.vlgmr.msra.gmra.mrb[8].mxu1 %vm383_vm0, %v107_v59 }
 0x271   :  { %866 = vmatpush1.bf16.msra.mxu0 %v2386_v3  ;;  %907 = vmatpush1.bf16.msra.mxu1 %v2388_v4 }
 0x272   :  { %867 = vmatprep.subr.bf16.mxu0 %v2391_v5  ;;  %908 = vmatprep.subr.bf16.mxu1 %v2395_v6 }
 0x273   :  { %897 = vmatprep.mubr.bf16.mxu0 %v2300_v0  ;;  %938 = vmatprep.mubr.bf16.mxu1 %v2300_v0 }
 0x275   :  { %868 = vmatpush1.bf16.msra.mxu0 %v2397_v7  ;;  %909 = vmatpush1.bf16.msra.mxu1 %v2400_v8 }
 0x276   :  { %869 = vmatprep.subr.bf16.mxu0 %v2403_v9  ;;  %910 = vmatprep.subr.bf16.mxu1 %v2405_v10 }
 0x279   :  { %870 = vmatpush1.bf16.msra.mxu0 %v2407_v11  ;;  %911 = vmatpush1.bf16.msra.mxu1 %v2409_v12 }
 0x27a   :  { %871 = vmatprep.subr.bf16.mxu0 %v2413_v13  ;;  %912 = vmatprep.subr.bf16.mxu1 %v2417_v14 }
 0x27d   :  { %872 = vmatpush1.bf16.msra.mxu0 %v2419_v15  ;;  %913 = vmatpush1.bf16.msra.mxu1 %v2423_v16 }
 0x27e   :  { %873 = vmatprep.subr.bf16.mxu0 %v2425_v17  ;;  %914 = vmatprep.subr.bf16.mxu1 %v2429_v18 }
 0x281   :  { %874 = vmatpush1.bf16.msra.mxu0 %v2431_v19  ;;  %915 = vmatpush1.bf16.msra.mxu1 %v2433_v20 }
 0x282   :  { %875 = vmatprep.subr.bf16.mxu0 %v2437_v21  ;;  %916 = vmatprep.subr.bf16.mxu1 %v2441_v22 }
 0x285   :  { %876 = vmatpush1.bf16.msra.mxu0 %v2443_v23  ;;  %917 = vmatpush1.bf16.msra.mxu1 %v2447_v24 }
 0x286   :  { %877 = vmatprep.subr.bf16.mxu0 %v2449_v25  ;;  %918 = vmatprep.subr.bf16.mxu1 %v2453_v26 }
 0x289   :  { %878 = vmatpush1.bf16.msra.mxu0 %v2457_v27  ;;  %919 = vmatpush1.bf16.msra.mxu1 %v2459_v28 }
 0x28a   :  { %879 = vmatprep.subr.bf16.mxu0 %v2463_v29  ;;  %920 = vmatprep.subr.bf16.mxu1 %v2465_v30 }
 0x28d   :  { %880 = vmatpush1.bf16.msra.mxu0 %v2469_v31  ;;  %921 = vmatpush1.bf16.msra.mxu1 %v2471_v32 }
 0x28e   :  { %950 = vmatprep.subr.bf16.mxu0 %v2475_v33  ;;  %991 = vmatprep.subr.bf16.mxu1 %v2477_v34 }
 0x343   :  { %v796_v41 = vpop.f32.mrb[8].mxu0  ;;  %v837_v42 = vpop.f32.mrb[8].mxu1 }
 0x344   :  { %v844_v43 = vmul.f32 0.5, %v796_v41  ;;  %v798_v44 = vpop.f32.mrb[9].mxu0  ;;  %v839_v45 = vpop.f32.mrb[9].mxu1  ;;  %v852_v51 = vmul.f32 0.5, %v837_v42 }
 0x345   :  { %v848_v46 = vmul.f32 0.5, %v798_v44  ;;  %v800_v47 = vpop.f32.mrb[10].mxu0  ;;  %v841_v48 = vpop.f32.mrb[10].mxu1 }
 0x346   :  { %2057 = vtanh.f32 %v844_v43  ;;  %v801_v49 = vpop.f32.mrb[11].mxu0  ;;  %v842_v50 = vpop.f32.mrb[11].mxu1 }
 0x347   :  { %2059 = vtanh.f32 %v848_v46 }
 0x348   :  { %2061 = vtanh.f32 %v839_v45 }
 0x349   :  { %2063 = vtanh.f32 %v852_v51 }
 0x350   :  { %v2058_v52 = vpop.eup %2057 }
 0x351   :  { %v846_v53 = vadd.f32 1.0, %v2058_v52  ;;  %v2060_v54 = vpop.eup %2059 }
 0x352   :  { %v850_v56 = vadd.f32 1.0, %v2060_v54  ;;  %v2062_v60 = vpop.eup %2061 }
 0x353   :  { %v847_v55 = vmul.f32 0.5, %v846_v53  ;;  %v2064_v37 = vpop.eup %2063 }
 0x354   :  { %v851_v58 = vmul.f32 0.5, %v850_v56  ;;  %v854_v38 = vadd.f32 1.0, %v2064_v37 }
 0x355   :  { %v857_v57 = vmul.f32 %v847_v55, %v2575_v61  ;;  %v109_v61 = vld [vmem:[#allocation4 + $0xc] sm:$0xf] }
 0x356   :  { %v858_v62 = vmul.f32 %v2062_v60, %v851_v58  ;;  %v855_v39 = vmul.f32 0.5, %v854_v38 }
 0x358   :  { %v2621_v63 = vadd.f32 %v858_v62, %v857_v57 }
 0x35a   :  { %2065 = vtanh.f32 %v2621_v63 }
 0x364   :  { %v2066_v40 = vpop.eup %2065 }
 0x365   :  { %v861_v59 = vmul.f32 %v2066_v40, %v855_v39 }
 0x367   :  { %863 = vst [vmem:[#allocation10 + $0x10] sm:$0xff] %v861_v59  ;;  %v864_v41 = vpack.c.bf16 %v861_v59, %v861_v59 }
 0x369   :  { %898 = vmatmul.mubr.bf16.vlgmr.msra.gmra.mrb[12].mxu0 %v864_v41  ;;  %939 = vmatmul.mubr.bf16.vlgmr.msra.gmra.mrb[12].mxu1 %v864_v41 }
 0x36a   :  { %951 = vmatpush1.bf16.msra.mxu0 %v2481_v35  ;;  %992 = vmatpush1.bf16.msra.mxu1 %v2483_v36 }
 0x36b   :  { %982 = vmatprep.mubr.bf16.mxu0 %v2300_v0  ;;  %1023 = vmatprep.mubr.bf16.mxu1 %v2300_v0 }
 0x36c   :  { %1053 = vmatprep.subr.bf16.mxu0 %v2381_v1  ;;  %1094 = vmatprep.subr.bf16.mxu1 %v2383_v2 }
 0x375   :  { %1895 = vmatmul.mubr.msk.bf16.vlgmr.msra.gmra.mrb[12].mxu0 %vm383_vm0, %v109_v61  ;;  %1896 = vmatmul.mubr.msk.bf16.vlgmr.msra.gmra.mrb[12].mxu1 %vm383_vm0, %v109_v61 }
 0x376   :  { %1054 = vmatpush1.bf16.msra.mxu0 %v2386_v3  ;;  %1095 = vmatpush1.bf16.msra.mxu1 %v2388_v4 }
 0x377   :  { %1055 = vmatprep.subr.bf16.mxu0 %v2391_v5  ;;  %1096 = vmatprep.subr.bf16.mxu1 %v2395_v6 }
 0x378   :  { %1085 = vmatprep.mubr.bf16.mxu0 %v2300_v0  ;;  %1126 = vmatprep.mubr.bf16.mxu1 %v2300_v0 }
 0x37a   :  { %1056 = vmatpush1.bf16.msra.mxu0 %v2397_v7  ;;  %1097 = vmatpush1.bf16.msra.mxu1 %v2400_v8 }
 0x37b   :  { %1057 = vmatprep.subr.bf16.mxu0 %v2403_v9  ;;  %1098 = vmatprep.subr.bf16.mxu1 %v2405_v10 }
 0x37e   :  { %1058 = vmatpush1.bf16.msra.mxu0 %v2407_v11  ;;  %1099 = vmatpush1.bf16.msra.mxu1 %v2409_v12 }
 0x37f   :  { %1059 = vmatprep.subr.bf16.mxu0 %v2413_v13  ;;  %1100 = vmatprep.subr.bf16.mxu1 %v2417_v14 }
 0x382   :  { %1060 = vmatpush1.bf16.msra.mxu0 %v2419_v15  ;;  %1101 = vmatpush1.bf16.msra.mxu1 %v2423_v16 }
 0x383   :  { %1061 = vmatprep.subr.bf16.mxu0 %v2425_v17  ;;  %1102 = vmatprep.subr.bf16.mxu1 %v2429_v18 }
 0x386   :  { %1062 = vmatpush1.bf16.msra.mxu0 %v2431_v19  ;;  %1103 = vmatpush1.bf16.msra.mxu1 %v2433_v20 }
 0x387   :  { %1063 = vmatprep.subr.bf16.mxu0 %v2437_v21  ;;  %1104 = vmatprep.subr.bf16.mxu1 %v2441_v22 }
 0x38a   :  { %1064 = vmatpush1.bf16.msra.mxu0 %v2443_v23  ;;  %1105 = vmatpush1.bf16.msra.mxu1 %v2447_v24 }
 0x38b   :  { %1065 = vmatprep.subr.bf16.mxu0 %v2449_v25  ;;  %1106 = vmatprep.subr.bf16.mxu1 %v2453_v26 }
 0x38e   :  { %1066 = vmatpush1.bf16.msra.mxu0 %v2457_v27  ;;  %1107 = vmatpush1.bf16.msra.mxu1 %v2459_v28 }
 0x38f   :  { %1067 = vmatprep.subr.bf16.mxu0 %v2463_v29  ;;  %1108 = vmatprep.subr.bf16.mxu1 %v2465_v30 }
 0x392   :  { %1068 = vmatpush1.bf16.msra.mxu0 %v2469_v31  ;;  %1109 = vmatpush1.bf16.msra.mxu1 %v2471_v32 }
 0x393   :  { %1138 = vmatprep.subr.bf16.mxu0 %v2475_v33  ;;  %1179 = vmatprep.subr.bf16.mxu1 %v2477_v34 }
 0x448   :  { %v984_v42 = vpop.f32.mrb[12].mxu0  ;;  %v1025_v43 = vpop.f32.mrb[12].mxu1 }
 0x449   :  { %v1032_v44 = vmul.f32 0.5, %v984_v42  ;;  %v986_v45 = vpop.f32.mrb[13].mxu0  ;;  %v1027_v46 = vpop.f32.mrb[13].mxu1  ;;  %v1040_v52 = vmul.f32 0.5, %v1025_v43 }
 0x44a   :  { %v1036_v47 = vmul.f32 0.5, %v986_v45  ;;  %v988_v48 = vpop.f32.mrb[14].mxu0  ;;  %v1029_v49 = vpop.f32.mrb[14].mxu1 }
 0x44b   :  { %2067 = vtanh.f32 %v1032_v44  ;;  %v989_v50 = vpop.f32.mrb[15].mxu0  ;;  %v1030_v51 = vpop.f32.mrb[15].mxu1 }
 0x44c   :  { %2069 = vtanh.f32 %v1036_v47 }
 0x44d   :  { %2071 = vtanh.f32 %v1027_v46 }
 0x44e   :  { %2073 = vtanh.f32 %v1040_v52 }
 0x455   :  { %v2068_v53 = vpop.eup %2067 }
 0x456   :  { %v1034_v54 = vadd.f32 1.0, %v2068_v53  ;;  %v2070_v55 = vpop.eup %2069 }
 0x457   :  { %v1038_v57 = vadd.f32 1.0, %v2070_v55  ;;  %v2072_v62 = vpop.eup %2071 }
 0x458   :  { %v1035_v56 = vmul.f32 0.5, %v1034_v54  ;;  %v2074_v39 = vpop.eup %2073 }
 0x459   :  { %v1039_v60 = vmul.f32 0.5, %v1038_v57  ;;  %v1042_v40 = vadd.f32 1.0, %v2074_v39 }
 0x45a   :  { %v1045_v58 = vmul.f32 %v1035_v56, %v2621_v63  ;;  %v111_v63 = vld [vmem:[#allocation4 + $0x10] sm:$0xf] }
 0x45b   :  { %v1046_v37 = vmul.f32 %v2072_v62, %v1039_v60  ;;  %v1043_v59 = vmul.f32 0.5, %v1042_v40 }
 0x45d   :  { %v2667_v38 = vadd.f32 %v1046_v37, %v1045_v58 }
 0x45f   :  { %2075 = vtanh.f32 %v2667_v38 }
 0x469   :  { %v2076_v41 = vpop.eup %2075 }
 0x46a   :  { %v1049_v61 = vmul.f32 %v2076_v41, %v1043_v59 }
 0x46c   :  { %1051 = vst [vmem:[#allocation10 + $0x18] sm:$0xff] %v1049_v61  ;;  %v1052_v42 = vpack.c.bf16 %v1049_v61, %v1049_v61 }
 0x46e   :  { %1086 = vmatmul.mubr.bf16.vlgmr.msra.gmra.mrb[16].mxu0 %v1052_v42  ;;  %1127 = vmatmul.mubr.bf16.vlgmr.msra.gmra.mrb[16].mxu1 %v1052_v42 }
 0x46f   :  { %1139 = vmatpush1.bf16.msra.mxu0 %v2481_v35  ;;  %1180 = vmatpush1.bf16.msra.mxu1 %v2483_v36 }
 0x470   :  { %1170 = vmatprep.mubr.bf16.mxu0 %v2300_v0  ;;  %1211 = vmatprep.mubr.bf16.mxu1 %v2300_v0 }
 0x471   :  { %1241 = vmatprep.subr.bf16.mxu0 %v2381_v1  ;;  %1282 = vmatprep.subr.bf16.mxu1 %v2383_v2 }
 0x47a   :  { %1897 = vmatmul.mubr.msk.bf16.vlgmr.msra.gmra.mrb[16].mxu0 %vm383_vm0, %v111_v63  ;;  %1898 = vmatmul.mubr.msk.bf16.vlgmr.msra.gmra.mrb[16].mxu1 %vm383_vm0, %v111_v63 }
 0x47b   :  { %1242 = vmatpush1.bf16.msra.mxu0 %v2386_v3  ;;  %1283 = vmatpush1.bf16.msra.mxu1 %v2388_v4 }
 0x47c   :  { %1243 = vmatprep.subr.bf16.mxu0 %v2391_v5  ;;  %1284 = vmatprep.subr.bf16.mxu1 %v2395_v6 }
 0x47d   :  { %1273 = vmatprep.mubr.bf16.mxu0 %v2300_v0  ;;  %1314 = vmatprep.mubr.bf16.mxu1 %v2300_v0 }
 0x47f   :  { %1244 = vmatpush1.bf16.msra.mxu0 %v2397_v7  ;;  %1285 = vmatpush1.bf16.msra.mxu1 %v2400_v8 }
 0x480   :  { %1245 = vmatprep.subr.bf16.mxu0 %v2403_v9  ;;  %1286 = vmatprep.subr.bf16.mxu1 %v2405_v10 }
 0x483   :  { %1246 = vmatpush1.bf16.msra.mxu0 %v2407_v11  ;;  %1287 = vmatpush1.bf16.msra.mxu1 %v2409_v12 }
 0x484   :  { %1247 = vmatprep.subr.bf16.mxu0 %v2413_v13  ;;  %1288 = vmatprep.subr.bf16.mxu1 %v2417_v14 }
 0x487   :  { %1248 = vmatpush1.bf16.msra.mxu0 %v2419_v15  ;;  %1289 = vmatpush1.bf16.msra.mxu1 %v2423_v16 }
 0x488   :  { %1249 = vmatprep.subr.bf16.mxu0 %v2425_v17  ;;  %1290 = vmatprep.subr.bf16.mxu1 %v2429_v18 }
 0x48b   :  { %1250 = vmatpush1.bf16.msra.mxu0 %v2431_v19  ;;  %1291 = vmatpush1.bf16.msra.mxu1 %v2433_v20 }
 0x48c   :  { %1251 = vmatprep.subr.bf16.mxu0 %v2437_v21  ;;  %1292 = vmatprep.subr.bf16.mxu1 %v2441_v22 }
 0x48f   :  { %1252 = vmatpush1.bf16.msra.mxu0 %v2443_v23  ;;  %1293 = vmatpush1.bf16.msra.mxu1 %v2447_v24 }
 0x490   :  { %1253 = vmatprep.subr.bf16.mxu0 %v2449_v25  ;;  %1294 = vmatprep.subr.bf16.mxu1 %v2453_v26 }
 0x493   :  { %1254 = vmatpush1.bf16.msra.mxu0 %v2457_v27  ;;  %1295 = vmatpush1.bf16.msra.mxu1 %v2459_v28 }
 0x494   :  { %1255 = vmatprep.subr.bf16.mxu0 %v2463_v29  ;;  %1296 = vmatprep.subr.bf16.mxu1 %v2465_v30 }
 0x497   :  { %1256 = vmatpush1.bf16.msra.mxu0 %v2469_v31  ;;  %1297 = vmatpush1.bf16.msra.mxu1 %v2471_v32 }
 0x498   :  { %1326 = vmatprep.subr.bf16.mxu0 %v2475_v33  ;;  %1367 = vmatprep.subr.bf16.mxu1 %v2477_v34 }
 0x54d   :  { %v1172_v43 = vpop.f32.mrb[16].mxu0  ;;  %v1213_v44 = vpop.f32.mrb[16].mxu1 }
 0x54e   :  { %v1220_v45 = vmul.f32 0.5, %v1172_v43  ;;  %v1174_v46 = vpop.f32.mrb[17].mxu0  ;;  %v1215_v47 = vpop.f32.mrb[17].mxu1  ;;  %v1228_v53 = vmul.f32 0.5, %v1213_v44  ;;  %v2125_v44 = vld [vmem:[#allocation9 + $0x44] ss:$16 sps:$4 sm:$0xff]  }
 0x54f   :  { %v1224_v48 = vmul.f32 0.5, %v1174_v46  ;;  %v1176_v49 = vpop.f32.mrb[18].mxu0  ;;  %v1217_v50 = vpop.f32.mrb[18].mxu1  ;;  %v2127_v46 = vld [vmem:[#allocation9 + $0x40] ss:$16 sps:$4 sm:$0xff]  }
 0x550   :  { %2077 = vtanh.f32 %v1220_v45  ;;  %v1177_v51 = vpop.f32.mrb[19].mxu0  ;;  %v1218_v52 = vpop.f32.mrb[19].mxu1  ;;  %v2126_v45 = vld [vmem:[#allocation9 + $0x4c] ss:$16 sps:$4 sm:$0xff]   ;;  %v2131_v50 = vld [vmem:[#allocation9 + $0x60] ss:$16 sps:$4 sm:$0xff]  }
 0x551   :  { %2079 = vtanh.f32 %v1224_v48  ;;  %v2129_v48 = vld [vmem:[#allocation9 + $0x64] ss:$16 sps:$4 sm:$0xff]   ;;  %v2130_v49 = vld [vmem:[#allocation9 + $0x6c] ss:$16 sps:$4 sm:$0xff]   ;;  %v2132_v51 = vld [vmem:[#allocation9 + $0x68] ss:$16 sps:$4 sm:$0xff]  }
 0x552   :  { %2081 = vtanh.f32 %v1215_v47  ;;  %v2128_v47 = vld [vmem:[#allocation9 + $0x48] ss:$16 sps:$4 sm:$0xff]   ;;  %v2133_v52 = vld [vmem:[#allocation9 + $0x84] ss:$16 sps:$4 sm:$0xff]  }
 0x553   :  { %2083 = vtanh.f32 %v1228_v53  ;;  %v2134_v53 = vld [vmem:[#allocation9 + $0x8c] ss:$16 sps:$4 sm:$0xff]  }
 0x55a   :  { %v2078_v54 = vpop.eup %2077 }
 0x55b   :  { %v1222_v55 = vadd.f32 1.0, %v2078_v54  ;;  %v2080_v56 = vpop.eup %2079  ;;  %v2135_v54 = vld [vmem:[#allocation9 + $0x80] ss:$16 sps:$4 sm:$0xff]  }
 0x55c   :  { %v1226_v58 = vadd.f32 1.0, %v2080_v56  ;;  %v2082_v37 = vpop.eup %2081  ;;  %v2137_v56 = vld [vmem:[#allocation9 + $0xa4] ss:$16 sps:$4 sm:$0xff]  }
 0x55d   :  { %v1223_v57 = vmul.f32 0.5, %v1222_v55  ;;  %v2084_v59 = vpop.eup %2083  ;;  %v2136_v55 = vld [vmem:[#allocation9 + $0x88] ss:$16 sps:$4 sm:$0xff]  }
 0x55e   :  { %v1227_v62 = vmul.f32 0.5, %v1226_v58  ;;  %v1230_v41 = vadd.f32 1.0, %v2084_v59  ;;  %v2139_v58 = vld [vmem:[#allocation9 + $0xa0] ss:$16 sps:$4 sm:$0xff]   ;;  %v2145_v59 = vld [vmem:[#allocation9 + $0xe4] ss:$16 sps:$4 sm:$0xff]  }
 0x55f   :  { %v1233_v60 = vmul.f32 %v1223_v57, %v2667_v38  ;;  %v113_v38 = vld [vmem:[#allocation4 + $0x14] sm:$0xf]  ;;  %v2138_v57 = vld [vmem:[#allocation9 + $0xac] ss:$16 sps:$4 sm:$0xff]  }
 0x560   :  { %v1234_v39 = vmul.f32 %v2082_v37, %v1227_v62  ;;  %v1231_v61 = vmul.f32 0.5, %v1230_v41  ;;  %v2141_v62 = vld [vmem:[#allocation9 + $0xc4] ss:$16 sps:$4 sm:$0xff]   ;;  %v2142_v37 = vld [vmem:[#allocation9 + $0xcc] ss:$16 sps:$4 sm:$0xff]  }
 0x561   :  { %v2146_v41 = vld [vmem:[#allocation9 + $0xec] ss:$16 sps:$4 sm:$0xff]  }
 0x562   :  { %v2713_v40 = vadd.f32 %v1234_v39, %v1233_v60  ;;  %v2140_v60 = vld [vmem:[#allocation9 + $0xa8] ss:$16 sps:$4 sm:$0xff]   ;;  %v2143_v39 = vld [vmem:[#allocation9 + $0xc0] ss:$16 sps:$4 sm:$0xff]  }
 0x564   :  { %2085 = vtanh.f32 %v2713_v40 }
 0x56e   :  { %v2086_v42 = vpop.eup %2085 }
 0x56f   :  { %v1237_v63 = vmul.f32 %v2086_v42, %v1231_v61  ;;  %v2147_v61 = vld [vmem:[#allocation9 + $0xe0] ss:$16 sps:$4 sm:$0xff]   ;;  %v2148_v42 = vld [vmem:[#allocation9 + $0xe8] ss:$16 sps:$4 sm:$0xff]  }
 0x571   :  { %1239 = vst [vmem:[#allocation10 + $0x20] sm:$0xff] %v1237_v63  ;;  %v1240_v43 = vpack.c.bf16 %v1237_v63, %v1237_v63  ;;  %v2149_v63 = vld [vmem:[#allocation7 + $0x4] ss:$16 sps:$4 sm:$0xff]  }
 0x573   :  { %1274 = vmatmul.mubr.bf16.vlgmr.msra.gmra.mrb[20].mxu0 %v1240_v43  ;;  %1315 = vmatmul.mubr.bf16.vlgmr.msra.gmra.mrb[20].mxu1 %v1240_v43  ;;  %v2150_v43 = vld [vmem:[#allocation7 + $0xc] ss:$16 sps:$4 sm:$0xff]  }
 0x574   :  { %1327 = vmatpush1.bf16.msra.mxu0 %v2481_v35  ;;  %1368 = vmatpush1.bf16.msra.mxu1 %v2483_v36 }
 0x575   :  { %1358 = vmatprep.mubr.bf16.mxu0 %v2300_v0  ;;  %1399 = vmatprep.mubr.bf16.mxu1 %v2300_v0 }
 0x576   :  { %1429 = vmatprep.subr.bf16.mxu0 %v2381_v1  ;;  %1470 = vmatprep.subr.bf16.mxu1 %v2383_v2 }
 0x57f   :  { %1899 = vmatmul.mubr.msk.bf16.vlgmr.msra.gmra.mrb[20].mxu0 %vm383_vm0, %v113_v38  ;;  %1900 = vmatmul.mubr.msk.bf16.vlgmr.msra.gmra.mrb[20].mxu1 %vm383_vm0, %v113_v38 }
 0x580   :  { %1430 = vmatpush1.bf16.msra.mxu0 %v2386_v3  ;;  %1471 = vmatpush1.bf16.msra.mxu1 %v2388_v4 }
 0x581   :  { %1431 = vmatprep.subr.bf16.mxu0 %v2391_v5  ;;  %1472 = vmatprep.subr.bf16.mxu1 %v2395_v6 }
 0x582   :  { %1461 = vmatprep.mubr.bf16.mxu0 %v2300_v0  ;;  %1502 = vmatprep.mubr.bf16.mxu1 %v2300_v0 }
 0x584   :  { %1432 = vmatpush1.bf16.msra.mxu0 %v2397_v7  ;;  %1473 = vmatpush1.bf16.msra.mxu1 %v2400_v8 }
 0x585   :  { %1433 = vmatprep.subr.bf16.mxu0 %v2403_v9  ;;  %1474 = vmatprep.subr.bf16.mxu1 %v2405_v10 }
 0x588   :  { %1434 = vmatpush1.bf16.msra.mxu0 %v2407_v11  ;;  %1475 = vmatpush1.bf16.msra.mxu1 %v2409_v12 }
 0x589   :  { %1435 = vmatprep.subr.bf16.mxu0 %v2413_v13  ;;  %1476 = vmatprep.subr.bf16.mxu1 %v2417_v14 }
 0x58c   :  { %1436 = vmatpush1.bf16.msra.mxu0 %v2419_v15  ;;  %1477 = vmatpush1.bf16.msra.mxu1 %v2423_v16 }
 0x58d   :  { %1437 = vmatprep.subr.bf16.mxu0 %v2425_v17  ;;  %1478 = vmatprep.subr.bf16.mxu1 %v2429_v18 }
 0x590   :  { %1438 = vmatpush1.bf16.msra.mxu0 %v2431_v19  ;;  %1479 = vmatpush1.bf16.msra.mxu1 %v2433_v20 }
 0x591   :  { %1439 = vmatprep.subr.bf16.mxu0 %v2437_v21  ;;  %1480 = vmatprep.subr.bf16.mxu1 %v2441_v22 }
 0x594   :  { %1440 = vmatpush1.bf16.msra.mxu0 %v2443_v23  ;;  %1481 = vmatpush1.bf16.msra.mxu1 %v2447_v24 }
 0x595   :  { %1441 = vmatprep.subr.bf16.mxu0 %v2449_v25  ;;  %1482 = vmatprep.subr.bf16.mxu1 %v2453_v26 }
 0x598   :  { %1442 = vmatpush1.bf16.msra.mxu0 %v2457_v27  ;;  %1483 = vmatpush1.bf16.msra.mxu1 %v2459_v28  ;;  %v2117_v28 = vld [vmem:[#allocation9 + $0x4] ss:$16 sps:$4 sm:$0xff]  }
 0x599   :  { %1443 = vmatprep.subr.bf16.mxu0 %v2463_v29  ;;  %1484 = vmatprep.subr.bf16.mxu1 %v2465_v30  ;;  %v2118_v29 = vld [vmem:[#allocation9 + $0xc] ss:$16 sps:$4 sm:$0xff]   ;;  %v115_v30 = vld [vmem:[#allocation4 + $0x18] sm:$0xf] }
 0x59c   :  { %1444 = vmatpush1.bf16.msra.mxu0 %v2469_v31  ;;  %1485 = vmatpush1.bf16.msra.mxu1 %v2471_v32  ;;  %v2119_v31 = vld [vmem:[#allocation9] ss:$16 sps:$4 sm:$0xff]   ;;  %v2120_v32 = vld [vmem:[#allocation9 + $0x8] ss:$16 sps:$4 sm:$0xff]  }
 0x59d   :  { %1514 = vmatprep.subr.bf16.mxu0 %v2475_v33  ;;  %1555 = vmatprep.subr.bf16.mxu1 %v2477_v34  ;;  %v2121_v33 = vld [vmem:[#allocation9 + $0x24] ss:$16 sps:$4 sm:$0xff]   ;;  %v2122_v34 = vld [vmem:[#allocation9 + $0x2c] ss:$16 sps:$4 sm:$0xff]  }
 0x652   :  { %v1360_v1 = vpop.f32.mrb[20].mxu0  ;;  %v1401_v2 = vpop.f32.mrb[20].mxu1 }
 0x653   :  { %v1408_v3 = vmul.f32 0.5, %v1360_v1  ;;  %v1362_v4 = vpop.f32.mrb[21].mxu0  ;;  %v1403_v5 = vpop.f32.mrb[21].mxu1  ;;  %v1416_v11 = vmul.f32 0.5, %v1401_v2 }
 0x654   :  { %v1412_v6 = vmul.f32 0.5, %v1362_v4  ;;  %v1364_v7 = vpop.f32.mrb[22].mxu0  ;;  %v1405_v8 = vpop.f32.mrb[22].mxu1 }
 0x655   :  { %2087 = vtanh.f32 %v1408_v3  ;;  %v1365_v9 = vpop.f32.mrb[23].mxu0  ;;  %v1406_v10 = vpop.f32.mrb[23].mxu1 }
 0x656   :  { %2089 = vtanh.f32 %v1412_v6 }
 0x657   :  { %2091 = vtanh.f32 %v1403_v5 }
 0x658   :  { %2093 = vtanh.f32 %v1416_v11 }
 0x65f   :  { %v2088_v12 = vpop.eup %2087 }
 0x660   :  { %v1410_v13 = vadd.f32 1.0, %v2088_v12  ;;  %v2090_v14 = vpop.eup %2089 }
 0x661   :  { %v1414_v16 = vadd.f32 1.0, %v2090_v14  ;;  %v2092_v19 = vpop.eup %2091 }
 0x662   :  { %v1411_v15 = vmul.f32 0.5, %v1410_v13  ;;  %v2094_v22 = vpop.eup %2093 }
 0x663   :  { %v1415_v18 = vmul.f32 0.5, %v1414_v16  ;;  %v1418_v23 = vadd.f32 1.0, %v2094_v22 }
 0x664   :  { %v1421_v17 = vmul.f32 %v1411_v15, %v2713_v40  ;;  %v2144_v40 = vld [vmem:[#allocation9 + $0xc8] ss:$16 sps:$4 sm:$0xff]  }
 0x665   :  { %v1422_v20 = vmul.f32 %v2092_v19, %v1415_v18  ;;  %v1419_v24 = vmul.f32 0.5, %v1418_v23 }
 0x667   :  { %v2759_v21 = vadd.f32 %v1422_v20, %v1421_v17 }
 0x669   :  { %2095 = vtanh.f32 %v2759_v21 }
 0x673   :  { %v2096_v25 = vpop.eup %2095 }
 0x674   :  { %v1425_v26 = vmul.f32 %v2096_v25, %v1419_v24 }
 0x676   :  { %1427 = vst [vmem:[#allocation10 + $0x28] sm:$0xff] %v1425_v26  ;;  %v1428_v27 = vpack.c.bf16 %v1425_v26, %v1425_v26 }
 0x678   :  { %1462 = vmatmul.mubr.bf16.vlgmr.msra.gmra.mrb[24].mxu0 %v1428_v27  ;;  %1503 = vmatmul.mubr.bf16.vlgmr.msra.gmra.mrb[24].mxu1 %v1428_v27 }
 0x679   :  { %1515 = vmatpush1.bf16.msra.mxu0 %v2481_v35  ;;  %1556 = vmatpush1.bf16.msra.mxu1 %v2483_v36  ;;  %v2123_v35 = vld [vmem:[#allocation9 + $0x20] ss:$16 sps:$4 sm:$0xff]   ;;  %v2124_v36 = vld [vmem:[#allocation9 + $0x28] ss:$16 sps:$4 sm:$0xff]  }
 0x67a   :  { %1546 = vmatprep.mubr.bf16.mxu0 %v2300_v0  ;;  %1587 = vmatprep.mubr.bf16.mxu1 %v2300_v0 }
 0x67b   :  { %1617 = vmatprep.subr.bf16.mxu0 %v2117_v28  ;;  %1658 = vmatprep.subr.bf16.mxu1 %v2118_v29  ;;  %v2151_v28 = vld [vmem:[#allocation7] ss:$16 sps:$4 sm:$0xff]   ;;  %v2152_v29 = vld [vmem:[#allocation7 + $0x8] ss:$16 sps:$4 sm:$0xff]  }
 0x684   :  { %1901 = vmatmul.mubr.msk.bf16.vlgmr.msra.gmra.mrb[24].mxu0 %vm383_vm0, %v115_v30  ;;  %1902 = vmatmul.mubr.msk.bf16.vlgmr.msra.gmra.mrb[24].mxu1 %vm383_vm0, %v115_v30 }
 0x685   :  { %1618 = vmatpush1.bf16.msra.mxu0 %v2119_v31  ;;  %1659 = vmatpush1.bf16.msra.mxu1 %v2120_v32 }
 0x686   :  { %1619 = vmatprep.subr.bf16.mxu0 %v2121_v33  ;;  %1660 = vmatprep.subr.bf16.mxu1 %v2122_v34 }
 0x687   :  { %1649 = vmatprep.mubr.bf16.mxu0 %v2300_v0  ;;  %1690 = vmatprep.mubr.bf16.mxu1 %v2300_v0 }
 0x689   :  { %1620 = vmatpush1.bf16.msra.mxu0 %v2123_v35  ;;  %1661 = vmatpush1.bf16.msra.mxu1 %v2124_v36 }
 0x68a   :  { %1621 = vmatprep.subr.bf16.mxu0 %v2125_v44  ;;  %1662 = vmatprep.subr.bf16.mxu1 %v2126_v45 }
 0x68d   :  { %1622 = vmatpush1.bf16.msra.mxu0 %v2127_v46  ;;  %1663 = vmatpush1.bf16.msra.mxu1 %v2128_v47 }
 0x68e   :  { %1623 = vmatprep.subr.bf16.mxu0 %v2129_v48  ;;  %1664 = vmatprep.subr.bf16.mxu1 %v2130_v49 }
 0x691   :  { %1624 = vmatpush1.bf16.msra.mxu0 %v2131_v50  ;;  %1665 = vmatpush1.bf16.msra.mxu1 %v2132_v51 }
 0x692   :  { %1625 = vmatprep.subr.bf16.mxu0 %v2133_v52  ;;  %1666 = vmatprep.subr.bf16.mxu1 %v2134_v53 }
 0x695   :  { %1626 = vmatpush1.bf16.msra.mxu0 %v2135_v54  ;;  %1667 = vmatpush1.bf16.msra.mxu1 %v2136_v55 }
 0x696   :  { %1627 = vmatprep.subr.bf16.mxu0 %v2137_v56  ;;  %1668 = vmatprep.subr.bf16.mxu1 %v2138_v57 }
 0x699   :  { %1628 = vmatpush1.bf16.msra.mxu0 %v2139_v58  ;;  %1669 = vmatpush1.bf16.msra.mxu1 %v2140_v60 }
 0x69a   :  { %1629 = vmatprep.subr.bf16.mxu0 %v2141_v62  ;;  %1670 = vmatprep.subr.bf16.mxu1 %v2142_v37 }
 0x69d   :  { %1630 = vmatpush1.bf16.msra.mxu0 %v2143_v39  ;;  %1671 = vmatpush1.bf16.msra.mxu1 %v2144_v40 }
 0x69e   :  { %1631 = vmatprep.subr.bf16.mxu0 %v2145_v59  ;;  %1672 = vmatprep.subr.bf16.mxu1 %v2146_v41 }
 0x6a1   :  { %1632 = vmatpush1.bf16.msra.mxu0 %v2147_v61  ;;  %1673 = vmatpush1.bf16.msra.mxu1 %v2148_v42 }
 0x6a2   :  { %1702 = vmatprep.subr.bf16.mxu0 %v2149_v63  ;;  %1743 = vmatprep.subr.bf16.mxu1 %v2150_v43 }
 0x757   :  { %v1548_v38 = vpop.f32.mrb[24].mxu0  ;;  %v1589_v1 = vpop.f32.mrb[24].mxu1 }
 0x758   :  { %v1596_v2 = vmul.f32 0.5, %v1548_v38  ;;  %v1550_v3 = vpop.f32.mrb[25].mxu0  ;;  %v1591_v4 = vpop.f32.mrb[25].mxu1  ;;  %v1604_v10 = vmul.f32 0.5, %v1589_v1 }
 0x759   :  { %v1600_v5 = vmul.f32 0.5, %v1550_v3  ;;  %v1552_v6 = vpop.f32.mrb[26].mxu0  ;;  %v1593_v7 = vpop.f32.mrb[26].mxu1 }
 0x75a   :  { %2097 = vtanh.f32 %v1596_v2  ;;  %v1553_v8 = vpop.f32.mrb[27].mxu0  ;;  %v1594_v9 = vpop.f32.mrb[27].mxu1 }
 0x75b   :  { %2099 = vtanh.f32 %v1600_v5 }
 0x75c   :  { %2101 = vtanh.f32 %v1591_v4 }
 0x75d   :  { %2103 = vtanh.f32 %v1604_v10 }
 0x764   :  { %v2098_v11 = vpop.eup %2097 }
 0x765   :  { %v1598_v12 = vadd.f32 1.0, %v2098_v11  ;;  %v2100_v13 = vpop.eup %2099 }
 0x766   :  { %v1602_v15 = vadd.f32 1.0, %v2100_v13  ;;  %v2102_v18 = vpop.eup %2101 }
 0x767   :  { %v1599_v14 = vmul.f32 0.5, %v1598_v12  ;;  %v2104_v22 = vpop.eup %2103 }
 0x768   :  { %v1603_v17 = vmul.f32 0.5, %v1602_v15  ;;  %v1606_v23 = vadd.f32 1.0, %v2104_v22 }
 0x769   :  { %v1609_v16 = vmul.f32 %v1599_v14, %v2759_v21  ;;  %v117_v21 = vld [vmem:[#allocation4 + $0x1c] sm:$0xf] }
 0x76a   :  { %v1610_v19 = vmul.f32 %v2102_v18, %v1603_v17  ;;  %v1607_v24 = vmul.f32 0.5, %v1606_v23 }
 0x76c   :  { %v1611_v20 = vadd.f32 %v1610_v19, %v1609_v16 }
 0x76e   :  { %2105 = vtanh.f32 %v1611_v20 }
 0x778   :  { %v2106_v25 = vpop.eup %2105 }
 0x779   :  { %v1613_v26 = vmul.f32 %v2106_v25, %v1607_v24 }
 0x77b   :  { %1615 = vst [vmem:[#allocation10 + $0x30] sm:$0xff] %v1613_v26  ;;  %v1616_v27 = vpack.c.bf16 %v1613_v26, %v1613_v26 }
 0x77d   :  { %1650 = vmatmul.mubr.bf16.vlgmr.msra.gmra.mrb[28].mxu0 %v1616_v27  ;;  %1691 = vmatmul.mubr.bf16.vlgmr.msra.gmra.mrb[28].mxu1 %v1616_v27 }
 0x77e   :  { %1703 = vmatpush1.bf16.msra.mxu0 %v2151_v28  ;;  %1744 = vmatpush1.bf16.msra.mxu1 %v2152_v29 }
 0x77f   :  { %1734 = vmatprep.mubr.bf16.mxu0 %v2300_v0  ;;  %1775 = vmatprep.mubr.bf16.mxu1 %v2300_v0 }
 0x789   :  { %1903 = vmatmul.mubr.msk.bf16.vlgmr.msra.gmra.mrb[28].mxu0 %vm383_vm0, %v117_v21  ;;  %1904 = vmatmul.mubr.msk.bf16.vlgmr.msra.gmra.mrb[28].mxu1 %vm383_vm0, %v117_v21 }
 0x85c   :  { %v1736_v30 = vpop.f32.mrb[28].mxu0  ;;  %v1777_v31 = vpop.f32.mrb[28].mxu1 }
 0x85d   :  { %v1784_v32 = vmul.f32 0.5, %v1736_v30  ;;  %v1738_v33 = vpop.f32.mrb[29].mxu0  ;;  %v1779_v34 = vpop.f32.mrb[29].mxu1  ;;  %v1792_v47 = vmul.f32 0.5, %v1777_v31 }
 0x85e   :  { %v1788_v35 = vmul.f32 0.5, %v1738_v33  ;;  %v1740_v36 = vpop.f32.mrb[30].mxu0  ;;  %v1781_v44 = vpop.f32.mrb[30].mxu1 }
 0x85f   :  { %2107 = vtanh.f32 %v1784_v32  ;;  %v1741_v45 = vpop.f32.mrb[31].mxu0  ;;  %v1782_v46 = vpop.f32.mrb[31].mxu1 }
 0x860   :  { %2109 = vtanh.f32 %v1788_v35 }
 0x861   :  { %2111 = vtanh.f32 %v1779_v34 }
 0x862   :  { %2113 = vtanh.f32 %v1792_v47 }
 0x869   :  { %v2108_v0 = vpop.eup %2107 }
 0x86a   :  { %v1786_v48 = vadd.f32 1.0, %v2108_v0  ;;  %v2110_v49 = vpop.eup %2109 }
 0x86b   :  { %v1790_v51 = vadd.f32 1.0, %v2110_v49  ;;  %v2112_v54 = vpop.eup %2111 }
 0x86c   :  { %v1787_v50 = vmul.f32 0.5, %v1786_v48  ;;  %v2114_v57 = vpop.eup %2113 }
 0x86d   :  { %v1791_v53 = vmul.f32 0.5, %v1790_v51  ;;  %v1794_v58 = vadd.f32 1.0, %v2114_v57 }
 0x86e   :  { %v1797_v52 = vmul.f32 %v1787_v50, %v1611_v20 }
 0x86f   :  { %v1798_v55 = vmul.f32 %v2112_v54, %v1791_v53  ;;  %v1795_v60 = vmul.f32 0.5, %v1794_v58 }
 0x871   :  { %v1799_v56 = vadd.f32 %v1798_v55, %v1797_v52 }
 0x873   :  { %1807 = vst [vmem:[#allocation13] sm:$0xff] %v1799_v56  ;;  %2115 = vtanh.f32 %v1799_v56 }
 0x87d   :  { %v2116_v62 = vpop.eup %2115 }
 0x87e   :  { %v1801_v37 = vmul.f32 %v2116_v62, %v1795_v60 }
 0x880   :  { %1803 = vst [vmem:[#allocation10 + $0x38] sm:$0xff] %v1801_v37  ;;  %1806 = vst [vmem:[#allocation11] sm:$0xff] %v1801_v37 }
 0x881   :  { %2230 = shalt.err (!%p2227_p0)
}
 0x882   :  { %s2231_s14 = scalar_lea.hbm %s2829_s4, 128 }
 0x883   :  { %p2232_p1 = scmp.ne.s32.totalorder %s2829_s4, %s2231_s14  ;;  %p2235_p2 = scmp.lt.u32.totalorder %s2231_s14, %s2829_s4 }
 0x885   :  { %p2237_p3 = pnand %p2235_p2, %p2232_p1 }
 0x887   :  { %2240 = shalt.err (!%p2237_p3)
}
 0x888   :  { %1829 = dma.vmem_to_hbm [thread:$0]  %s1827_s28, 128, %s2829_s4, [#allocation12]  }
 0x889   :  { %s2241_s20 = scalar_lea.vmem %s2775_s8, 1024  ;;  %p2246_p5 = scmp.lt.s32.totalorder %s2775_s8, %s2775_s8 }
 0x88a   :  { %p2242_p4 = scmp.ne.s32.totalorder %s2775_s8, %s2241_s20  ;;  %p2247_p6 = scmp.lt.s32.totalorder %s2241_s20, %s2241_s20 }
 0x88c   :  { %p2248_p7 = por %p2247_p6, %p2246_p5 }
 0x88e   :  { %p2249_p8 = pnand %p2248_p7, %p2242_p4 }
 0x890   :  { %2252 = shalt.err (!%p2249_p8)
}
 0x891   :  { %s2253_s23 = scalar_lea.hbm %s2828_s3, 1024 }
 0x892   :  { %p2254_p9 = scmp.ne.s32.totalorder %s2828_s3, %s2253_s23  ;;  %p2257_p10 = scmp.lt.u32.totalorder %s2253_s23, %s2828_s3 }
 0x894   :  { %p2259_p11 = pnand %p2257_p10, %p2254_p9 }
 0x896   :  { %2262 = shalt.err (!%p2259_p11)
}
 0x897   :  { %s2305_s4 = smov 128   ;;  %s2306_s30 = smov 8  }
 0x898   :  { %1819 = dma.vmem_to_hbm [thread:$0]  %s2775_s8, 1024, %s2828_s3, [#allocation6], %s2305_s4, %s2305_s4, %s2306_s30  }
 0x899   :  { %s2263_s7 = scalar_lea.vmem %s2777_s10, 128  ;;  %p2268_p13 = scmp.lt.s32.totalorder %s2777_s10, %s2777_s10 }
 0x89a   :  { %p2264_p12 = scmp.ne.s32.totalorder %s2777_s10, %s2263_s7  ;;  %p2269_p0 = scmp.lt.s32.totalorder %s2263_s7, %s2263_s7 }
 0x89c   :  { %p2270_p1 = por %p2269_p0, %p2268_p13 }
 0x89e   :  { %p2271_p2 = pnand %p2270_p1, %p2264_p12 }
 0x8a0   :  { %2274 = shalt.err (!%p2271_p2)
}
 0x8a1   :  { %s2275_s29 = scalar_lea.hbm %s2830_s5, 128 }
 0x8a2   :  { %p2276_p3 = scmp.ne.s32.totalorder %s2830_s5, %s2275_s29  ;;  %p2279_p4 = scmp.lt.u32.totalorder %s2275_s29, %s2830_s5 }
 0x8a4   :  { %p2281_p5 = pnand %p2279_p4, %p2276_p3 }
 0x8a6   :  { %2284 = shalt.err (!%p2281_p5)
}
 0x8a7   :  { %1839 = dma.vmem_to_hbm [thread:$0]  %s2777_s10, 128, %s2830_s5, [#allocation12]  }
 0x8a8   :  { %2289 = dma.done.wait [#allocation6], 1024  }
 0x8a9   :  { %2290 = vsyncadd [#allocation6], 4294966272 }
 0x8aa   :  { %2291 = dma.done.wait [#allocation12], 256  }
 0x8ab   :  { %2292 = vsyncadd [#allocation12], 4294967040 }
 0x8ac   :  { %1849 = vsyncpa [#allocation5], 1 }
 0x8ad   :  { %1850 = vsyncpa [#allocation8], 1 }
 0x8ae   :  { %1851 = vsyncpa [#allocation6], 1 }
 0x8af   :  { %1852 = vsyncpa [#allocation12], 1 }

</bundles_post_ra>
